<compile_context>
chip_gen: v5e
topology: v5e:2x2
jax: 0.10.0
libtpu: 0.0.40
codegen_flags: <defaults>
</compile_context>

<pallas_src>
import functools

import jax
import jax.numpy as jnp
import numpy as np
from jax.experimental import pallas as pl
from jax.experimental.pallas import tpu as pltpu

NEG_SLOPE = 0.01  # torch F.leaky_relu default


def _leaky(x):
    return jnp.where(x >= 0.0, x, NEG_SLOPE * x)


def _round_up(x, m):
    return ((x + m - 1) // m) * m


# ---------------------------------------------------------------------------
# Fused kernel: text CNN (doc + reviews) + id CNN + ui_linear + sentiment
# weighting + mix_layer + doc_linear + fc_layer, TB samples per grid step.
# ---------------------------------------------------------------------------
def fused_kernel(text_ref, ui_ref, pw_ref, idemb_ref,
                 wcat_ref, pool_ref, bid_ref, S_ref,
                 wpk_ref, hb_ref,
                 out_ref, *, tb, r_pad, n_doc_rows, E, F):
    f32 = jnp.float32

    # ---- shared text CNN for all TB samples: one bf16 MXU dot, f32 acc.
    # K padded to 128; conv bias folded into the ones column of the input.
    conv = _leaky(jnp.dot(text_ref[...], wcat_ref[...],
                          preferred_element_type=f32))            # (TB*R_pad, F)

    # review avg-pool for all TB samples: one block-diagonal pooling matmul
    fea = jnp.dot(pool_ref[...], conv,
                  preferred_element_type=f32)                     # (TB*r_num, F)

    # doc max-pool: per-sample reduction over sublane-aligned static slices
    doc_parts = [jnp.max(conv[t * r_pad: t * r_pad + n_doc_rows, :],
                         axis=0, keepdims=True) for t in range(tb)]
    doc_raw = jnp.concatenate(doc_parts, axis=0)                  # (TB, F)

    # ---- id CNN (Conv1d over the id-embedding axis) as banded-weight matmul
    # (bias folded into the augmented ones column of ui).
    z = _leaky(jnp.dot(ui_ref[0], bid_ref[...],
                       preferred_element_type=f32))               # (TB*r_num, Lid*F)
    # mean-pool fused with ui_linear at trace time: S = tile(ui_W, (Lid,1))/Lid
    u = _leaky(jnp.dot(z.astype(jnp.bfloat16), S_ref[...],
                       preferred_element_type=f32)
               + hb_ref[0:1, :E])                                 # (TB*r_num, E)

    # sentiment-softmax weighted sums (softmax hoisted to the wrapper and
    # packed as a block-diagonal (TB, TB*r_num) matrix)
    pwb = pw_ref[0]
    fea_w = jnp.dot(pwb, jnp.maximum(fea, 0.0),
                    preferred_element_type=f32)                   # (TB, F)
    u_w = jnp.dot(pwb, jnp.maximum(u, 0.0),
                  preferred_element_type=f32)                     # (TB, E)

    # mix_layer with split weights (no lane concat); dropout: identity (eval)
    r = (jnp.dot(fea_w, wpk_ref[0:F, :F], preferred_element_type=f32)
         + jnp.dot(u_w, wpk_ref[F:F + E, :F], preferred_element_type=f32)
         + hb_ref[1:2, :F])                                       # (TB, F)

    doc_fea = (jnp.dot(doc_raw, wpk_ref[F + E:2 * F + E, :E],
                       preferred_element_type=f32) + hb_ref[2:3, :E])    # (TB, E)
    fc_out = (jnp.dot(r, wpk_ref[2 * F + E:3 * F + E, :2 * E],
                      preferred_element_type=f32) + hb_ref[3:4, :2 * E])  # (TB, 2E)

    # lane-dense output rows: [id_emb | doc_fea | fc_out] -> 4E lanes (=128)
    out_ref[0] = jnp.concatenate([idemb_ref[0], doc_fea, fc_out], axis=1)


def _pick_tile(bs, r_pad, row_cap=1024):
    """Largest TB dividing bs with >=2 grid steps (v7x: both TCs busy) and a
    bounded text block (TB*R_pad rows); trivially fits well under 64 MiB."""
    best = 1
    for tb in range(1, bs + 1):
        if bs % tb:
            continue
        if bs >= 2 and bs // tb < 2:
            continue
        if tb * r_pad > row_cap:
            continue
        best = tb
    return best


# ---------------------------------------------------------------------------
# Full forward.  Embedding gathers / im2col / weight pre-packing are XLA glue;
# all matmuls, activations and pooling run inside the single fused kernel.
# ---------------------------------------------------------------------------
def pallas_forward(params, doc, reviews, ids, ids_list, sentiments):
    f32, bf16 = jnp.float32, jnp.bfloat16
    bs, r_num, r_len = reviews.shape
    doc_len = doc.shape[1]
    wemb = params["word_embs"]
    wd = wemb.shape[1]
    E = params["id_emb"].shape[1]
    F = params["cnn_b"].shape[1]
    ks = params["cnn_W"].shape[0]
    L = r_len - ks + 1
    Ld = doc_len - ks + 1
    Lid = E - ks + 1
    KD = ks * wd
    KDp = _round_up(KD + 1, 128)        # pad K to 128 (+1 bias column)
    LF = Lid * F
    R_text = Ld + r_num * L
    R_pad = _round_up(R_text, 8)        # sublane-align each sample's row block
    Ep = _round_up(E + 1, 8)            # +1 bias column for the id conv

    TB = _pick_tile(bs, R_pad)
    G = bs // TB

    # ---------------- embedding gathers (XLA glue) ------------------------
    # TODO(synk): at production vocab/seq sizes, move the gather + im2col into
    # the kernel (PrefetchScalarGridSpec with token ids as scalar prefetch and
    # per-row DMA of wemb rows) to kill the ks-x im2col HBM round-trip.
    rev_e = wemb[reviews]                                  # (bs, r_num, r_len, wd)
    doc_e = wemb[doc]                                      # (bs, doc_len, wd)
    id_emb = params["id_emb"][ids].reshape(G, TB, E)
    ui_e = params["ui_id_emb"][ids_list].reshape(bs * r_num, E)

    # sentiment softmax hoisted to the wrapper, packed block-diagonally
    pw = jax.nn.softmax(sentiments[:, :, 0] / 10000.0, axis=1)      # (bs, r_num)
    pw_g = pw.reshape(G, TB, r_num)
    eye = jnp.eye(TB, dtype=f32)
    pw_blk = (eye[None, :, :, None] * pw_g[:, None, :, :]
              ).reshape(G, TB, TB * r_num)

    # ---------------- im2col, K padded to 128, bias folded via ones col ----
    rev_col = jnp.concatenate([rev_e[:, :, k:k + L, :] for k in range(ks)],
                              axis=-1).reshape(bs, r_num * L, KD)
    doc_col = jnp.concatenate([doc_e[:, k:k + Ld, :] for k in range(ks)],
                              axis=-1)                     # (bs, Ld, KD)
    text_col = jnp.concatenate([doc_col, rev_col], axis=1)  # (bs, R_text, KD)
    text_col = jnp.concatenate(
        [text_col, jnp.ones((bs, R_text, 1), f32),
         jnp.zeros((bs, R_text, KDp - KD - 1), f32)], axis=-1)
    text_col = jnp.concatenate(
        [text_col, jnp.zeros((bs, R_pad - R_text, KDp), f32)], axis=1)
    text_flat = text_col.reshape(bs * R_pad, KDp).astype(bf16)

    # id-conv input with a ones column (bias fold), sublane-aligned width
    ui_aug = jnp.concatenate(
        [ui_e, jnp.ones((bs * r_num, 1), f32),
         jnp.zeros((bs * r_num, Ep - E - 1), f32)],
        axis=-1).reshape(G, TB * r_num, Ep).astype(bf16)

    # ---------------- pre-packed weights (trace-time, tiny) ---------------
    w_cat = jnp.concatenate(
        [params["cnn_W"].reshape(KD, F), params["cnn_b"],
         jnp.zeros((KDp - KD - 1, F), f32)], axis=0).astype(bf16)    # (KDp, F)

    # per-tile review average-pool matrix (block diagonal over TB samples)
    pool_np = np.zeros((TB * r_num, TB * R_pad), np.float32)
    for t in range(TB):
        for j in range(r_num):
            s = t * R_pad + Ld + j * L
            pool_np[t * r_num + j, s:s + L] = 1.0 / L
    pool = jnp.asarray(pool_np)

    # banded weight for the D==1 id conv (+ bias row); mean-pool fused with
    # ui_linear: S = tile(ui_W, (Lid, 1)) / Lid.
    # TODO(synk): if E/F grow, replace the mostly-zero banded weight with ks
    # shifted dots + a sublane mean reduction (VMEM matters on v7x's 64 MiB).
    w_id = params["cnnid_W"][:, 0, :]                      # (ks, F)
    k_rel = np.arange(E)[:, None] - np.arange(Lid)[None, :]
    valid = jnp.asarray((k_rel >= 0) & (k_rel < ks))[:, :, None]
    b_core = jnp.where(valid, w_id[jnp.asarray(np.clip(k_rel, 0, ks - 1))], 0.0)
    b_core = b_core.reshape(E, LF)
    b_id = jnp.concatenate(
        [b_core, jnp.tile(params["cnnid_b"], (1, Lid)),
         jnp.zeros((Ep - E - 1, LF), f32)], axis=0).astype(bf16)     # (Ep, LF)
    S = (jnp.tile(params["ui_W"], (Lid, 1)) / Lid).astype(bf16)      # (LF, E)

    # packed head weights (sublane-stacked; only prefix lane slices in-kernel)
    W2 = 2 * E
    padw = lambda w: jnp.pad(w, ((0, 0), (0, W2 - w.shape[1])))
    wpk = jnp.concatenate([padw(params["mix_W"][:F]),      # rows [0, F)
                           padw(params["mix_W"][F:]),      # rows [F, F+E)
                           padw(params["doc_W"]),          # rows [F+E, 2F+E)
                           params["fc_W"]], axis=0)        # rows [2F+E, 3F+E)

    HBW = max(F, 2 * E)
    padb = lambda b: jnp.pad(b, ((0, 0), (0, HBW - b.shape[1])))
    hb = jnp.concatenate([padb(params["ui_b"]), padb(params["mix_b"]),
                          padb(params["doc_b"]), padb(params["fc_b"])], axis=0)

    # TODO(synk): mark the constant specs with pipeline_mode=pl.Buffered(1) to
    # halve their VMEM footprint once buffer_count=1 is universally supported.
    kern = functools.partial(fused_kernel, tb=TB, r_pad=R_pad,
                             n_doc_rows=Ld, E=E, F=F)
    out = pl.pallas_call(
        kern,
        out_shape=jax.ShapeDtypeStruct((G, TB, 4 * E), f32),
        grid=(G,),
        in_specs=[
            pl.BlockSpec((TB * R_pad, KDp), lambda g: (g, 0)),        # text
            pl.BlockSpec((1, TB * r_num, Ep), lambda g: (g, 0, 0)),   # ui_aug
            pl.BlockSpec((1, TB, TB * r_num), lambda g: (g, 0, 0)),   # pw_blk
            pl.BlockSpec((1, TB, E), lambda g: (g, 0, 0)),            # id_emb
            pl.BlockSpec((KDp, F), lambda g: (0, 0)),                 # w_cat
            pl.BlockSpec((TB * r_num, TB * R_pad), lambda g: (0, 0)), # pool
            pl.BlockSpec((Ep, LF), lambda g: (0, 0)),                 # b_id
            pl.BlockSpec((LF, E), lambda g: (0, 0)),                  # S
            pl.BlockSpec((3 * F + E, W2), lambda g: (0, 0)),          # wpk
            pl.BlockSpec((4, HBW), lambda g: (0, 0)),                 # hb
        ],
        out_specs=pl.BlockSpec((1, TB, 4 * E), lambda g: (g, 0, 0)),
        compiler_params=pltpu.CompilerParams(
            dimension_semantics=("parallel",)),
    )(text_flat, ui_aug, pw_blk, id_emb,
      w_cat, pool, b_id, S, wpk, hb)
    return out.reshape(bs, 2, 2 * E)


# ---------------------------------------------------------------------------
# Pure-JAX reference (same math, f32) for verification.
# ---------------------------------------------------------------------------
def conv_pool_ref(x, w, b, pool):
    N, T, D = x.shape
    ks, _, F = w.shape
    L = T - ks + 1
    acc = jnp.zeros((N, L, F), jnp.float32)
    for k in range(ks):
        acc = acc + jnp.einsum("ntd,df->ntf", x[:, k:k + L, :], w[k])
    acc = _leaky(acc + b[0])
    return acc.mean(axis=1) if pool == "avg" else acc.max(axis=1)


def reference_forward(params, doc, reviews, ids, ids_list, sentiments):
    bs, r_num, r_len = reviews.shape
    wemb = params["word_embs"]
    rev_e = wemb[reviews].reshape(bs * r_num, r_len, -1)
    fea = conv_pool_ref(rev_e, params["cnn_W"], params["cnn_b"], "avg")
    fea = fea.reshape(bs, r_num, -1)
    id_emb = params["id_emb"][ids]
    uie = params["ui_id_emb"][ids_list].reshape(bs * r_num, -1)[:, :, None]
    uid = conv_pool_ref(uie, params["cnnid_W"], params["cnnid_b"], "avg")
    uid = uid.reshape(bs, r_num, -1)
    u = _leaky(uid @ params["ui_W"] + params["ui_b"])
    rs = jnp.maximum(jnp.concatenate([fea, u], axis=2), 0.0)
    pw = jax.nn.softmax(sentiments[:, :, 0:1] / 10000.0, axis=1)
    r = (rs * pw).sum(axis=1)
    r = r @ params["mix_W"] + params["mix_b"]          # dropout: identity (eval)
    doc_e = wemb[doc]
    doc_fea = conv_pool_ref(doc_e, params["cnn_W"], params["cnn_b"], "max")
    doc_fea = doc_fea @ params["doc_W"] + params["doc_b"]
    out0 = jnp.concatenate([id_emb, doc_fea], axis=1)
    out1 = r @ params["fc_W"] + params["fc_b"]
    return jnp.stack([out0, out1], axis=1)


# ---------------------------------------------------------------------------
# Deterministic parameter init (shapes follow Net.__init__; synthetic values).
# Unused-in-forward layers (self.linear, self.attention_linear, cnn_i_id for
# uori=='user') are skipped.
# ---------------------------------------------------------------------------
def init_params(key, *, vocab, wd, E, F, ks, user_num, item_num):
    keys = jax.random.split(key, 9)
    uni = lambda k, shape: jax.random.uniform(k, shape, jnp.float32, -0.1, 0.1)
    xav = lambda k, shape, fi, fo: (jax.random.normal(k, shape, jnp.float32)
                                    * jnp.sqrt(2.0 / (fi + fo)))
    return {
        "word_embs": xav(keys[0], (vocab, wd), vocab, wd),
        "id_emb": uni(keys[1], (user_num, E)),
        "ui_id_emb": uni(keys[2], (item_num, E)),
        "cnn_W": xav(keys[3], (ks, wd, F), ks * wd, F),
        "cnn_b": jnp.full((1, F), 0.1, jnp.float32),
        "cnnid_W": xav(keys[4], (ks, 1, F), ks, F),
        "cnnid_b": jnp.full((1, F), 0.1, jnp.float32),
        "ui_W": uni(keys[5], (F, E)),
        "ui_b": jnp.full((1, E), 0.1, jnp.float32),
        "mix_W": uni(keys[6], (F + E, F)),
        "mix_b": jnp.full((1, F), 0.1, jnp.float32),
        "doc_W": uni(keys[7], (F, E)),
        "doc_b": jnp.full((1, E), 0.1, jnp.float32),
        "fc_W": uni(keys[8], (F, 2 * E)),
        "fc_b": jnp.full((1, 2 * E), 0.1, jnp.float32),
    }


if __name__ == "__main__":
    key = jax.random.PRNGKey(0)
    bs, r_num, r_len, doc_len = 8, 4, 16, 16
    vocab, wd, E, F, ks = 100, 32, 32, 32, 3
    user_num, item_num = 20, 30      # uori == 'user'

    pkey, dkey = jax.random.split(key)
    params = init_params(pkey, vocab=vocab, wd=wd, E=E, F=F, ks=ks,
                         user_num=user_num, item_num=item_num)

    k1, k2, k3, k4, k5 = jax.random.split(dkey, 5)
    doc = jax.random.randint(k1, (bs, doc_len), 0, vocab)
    reviews = jax.random.randint(k2, (bs, r_num, r_len), 0, vocab)
    ids = jax.random.randint(k3, (bs,), 0, user_num)
    ids_list = jax.random.randint(k4, (bs, r_num), 0, item_num)
    sentiments = jax.random.uniform(k5, (bs, r_num, 3), jnp.float32, -1.0, 1.0)

    out = jax.jit(pallas_forward)(params, doc, reviews, ids, ids_list, sentiments)
    out = jax.block_until_ready(out)
    assert out.shape == (bs, 2, 2 * E)

    ref = reference_forward(params, doc, reviews, ids, ids_list, sentiments)
    # bf16 MXU operands (f32 accumulation) -> slightly looser tolerance.
    np.testing.assert_allclose(np.asarray(out), np.asarray(ref),
                               rtol=2e-2, atol=2e-2)
    print("KERNEL_OK")
</pallas_src>

<mosaic_0001>
module attributes {stable_mosaic.version = 11 : i64} {
  func.func @fused_kernel(%arg0: i32, %arg1: memref<288x128xbf16, #tpu.memory_space<vmem>>, %arg2: memref<1x16x40xbf16, #tpu.memory_space<vmem>>, %arg3: memref<1x4x16xf32, #tpu.memory_space<vmem>>, %arg4: memref<1x4x32xf32, #tpu.memory_space<vmem>>, %arg5: memref<128x32xbf16, #tpu.memory_space<vmem>>, %arg6: memref<16x288xf32, #tpu.memory_space<vmem>>, %arg7: memref<40x960xbf16, #tpu.memory_space<vmem>>, %arg8: memref<960x32xbf16, #tpu.memory_space<vmem>>, %arg9: memref<128x64xf32, #tpu.memory_space<vmem>>, %arg10: memref<4x64xf32, #tpu.memory_space<vmem>>, %arg11: memref<1x4x128xf32, #tpu.memory_space<vmem>>) attributes {dimension_semantics = [#tpu.dimension_semantics<parallel>], iteration_bounds = array<i64: 2>, scalar_prefetch = 0 : i64, scratch_operands = 0 : i64, tpu.core_type = #tpu.core_type<tc>, window_params = [{transform_indices = @transform_0, window_bounds = array<i64: 288, 128>}, {transform_indices = @transform_1, window_bounds = array<i64: 1, 16, 40>}, {transform_indices = @transform_2, window_bounds = array<i64: 1, 4, 16>}, {transform_indices = @transform_3, window_bounds = array<i64: 1, 4, 32>}, {pipeline_mode = #tpu.pipeline_mode<synchronous>, transform_indices = @transform_4, window_bounds = array<i64: 128, 32>}, {pipeline_mode = #tpu.pipeline_mode<synchronous>, transform_indices = @transform_5, window_bounds = array<i64: 16, 288>}, {pipeline_mode = #tpu.pipeline_mode<synchronous>, transform_indices = @transform_6, window_bounds = array<i64: 40, 960>}, {pipeline_mode = #tpu.pipeline_mode<synchronous>, transform_indices = @transform_7, window_bounds = array<i64: 960, 32>}, {pipeline_mode = #tpu.pipeline_mode<synchronous>, transform_indices = @transform_8, window_bounds = array<i64: 128, 64>}, {pipeline_mode = #tpu.pipeline_mode<synchronous>, transform_indices = @transform_9, window_bounds = array<i64: 4, 64>}, {transform_indices = @transform_10, window_bounds = array<i64: 1, 4, 128>}]} {
    %c0 = arith.constant 0 : index
    %c0_0 = arith.constant 0 : index
    %0 = vector.load %arg1[%c0, %c0_0] : memref<288x128xbf16, #tpu.memory_space<vmem>>, vector<288x128xbf16>
    %c0_1 = arith.constant 0 : index
    %c0_2 = arith.constant 0 : index
    %1 = vector.load %arg5[%c0_1, %c0_2] : memref<128x32xbf16, #tpu.memory_space<vmem>>, vector<128x32xbf16>
    %cst = arith.constant dense<0.000000e+00> : vector<288x32xf32>
    %2 = tpu.matmul %0, %1, %cst {dimension_numbers = #tpu.dot_dimension_numbers<[1], [0], [0], [1], [0, 0, 1, 1], [], []>} : vector<288x128xbf16>, vector<128x32xbf16>, vector<288x32xf32> -> vector<288x32xf32>
    %cst_3 = arith.constant 0.000000e+00 : f32
    %3 = vector.broadcast %cst_3 : f32 to vector<288x32xf32>
    %4 = arith.cmpf oge, %2, %3 : vector<288x32xf32>
    %cst_4 = arith.constant 0.00999999977 : f32
    %5 = vector.broadcast %cst_4 : f32 to vector<288x32xf32>
    %6 = arith.mulf %5, %2 : vector<288x32xf32>
    %7 = arith.select %4, %2, %6 : vector<288x32xi1>, vector<288x32xf32>
    %c0_5 = arith.constant 0 : index
    %c0_6 = arith.constant 0 : index
    %8 = vector.load %arg6[%c0_5, %c0_6] : memref<16x288xf32, #tpu.memory_space<vmem>>, vector<16x288xf32>
    %cst_7 = arith.constant dense<0.000000e+00> : vector<16x32xf32>
    %9 = tpu.matmul %8, %7, %cst_7 {dimension_numbers = #tpu.dot_dimension_numbers<[1], [0], [0], [1], [0, 0, 1, 1], [], []>} : vector<16x288xf32>, vector<288x32xf32>, vector<16x32xf32> -> vector<16x32xf32>
    %10 = vector.extract_strided_slice %7 {offsets = [0, 0], sizes = [14, 32], strides = [1, 1]} : vector<288x32xf32> to vector<14x32xf32>
    %cst_8 = arith.constant dense<0xFF800000> : vector<32xf32>
    %11 = vector.multi_reduction <maximumf>, %10, %cst_8 [0] : vector<14x32xf32> to vector<32xf32>
    %12 = vector.shape_cast %11 : vector<32xf32> to vector<1x32xf32>
    %13 = vector.extract_strided_slice %7 {offsets = [72, 0], sizes = [14, 32], strides = [1, 1]} : vector<288x32xf32> to vector<14x32xf32>
    %cst_9 = arith.constant dense<0xFF800000> : vector<32xf32>
    %14 = vector.multi_reduction <maximumf>, %13, %cst_9 [0] : vector<14x32xf32> to vector<32xf32>
    %15 = vector.shape_cast %14 : vector<32xf32> to vector<1x32xf32>
    %16 = vector.extract_strided_slice %7 {offsets = [144, 0], sizes = [14, 32], strides = [1, 1]} : vector<288x32xf32> to vector<14x32xf32>
    %cst_10 = arith.constant dense<0xFF800000> : vector<32xf32>
    %17 = vector.multi_reduction <maximumf>, %16, %cst_10 [0] : vector<14x32xf32> to vector<32xf32>
    %18 = vector.shape_cast %17 : vector<32xf32> to vector<1x32xf32>
    %19 = vector.extract_strided_slice %7 {offsets = [216, 0], sizes = [14, 32], strides = [1, 1]} : vector<288x32xf32> to vector<14x32xf32>
    %cst_11 = arith.constant dense<0xFF800000> : vector<32xf32>
    %20 = vector.multi_reduction <maximumf>, %19, %cst_11 [0] : vector<14x32xf32> to vector<32xf32>
    %21 = vector.shape_cast %20 : vector<32xf32> to vector<1x32xf32>
    %22 = tpu.concatenate %12, %15, %18, %21 in 0 : vector<1x32xf32>, vector<1x32xf32>, vector<1x32xf32>, vector<1x32xf32> -> vector<4x32xf32>
    %c0_12 = arith.constant 0 : index
    %c0_13 = arith.constant 0 : index
    %c0_14 = arith.constant 0 : index
    %23 = vector.load %arg2[%c0_12, %c0_13, %c0_14] : memref<1x16x40xbf16, #tpu.memory_space<vmem>>, vector<1x16x40xbf16>
    %24 = vector.shape_cast %23 : vector<1x16x40xbf16> to vector<16x40xbf16>
    %c0_15 = arith.constant 0 : index
    %c0_16 = arith.constant 0 : index
    %25 = vector.load %arg7[%c0_15, %c0_16] : memref<40x960xbf16, #tpu.memory_space<vmem>>, vector<40x960xbf16>
    %cst_17 = arith.constant dense<0.000000e+00> : vector<16x960xf32>
    %26 = tpu.matmul %24, %25, %cst_17 {dimension_numbers = #tpu.dot_dimension_numbers<[1], [0], [0], [1], [0, 0, 1, 1], [], []>} : vector<16x40xbf16>, vector<40x960xbf16>, vector<16x960xf32> -> vector<16x960xf32>
    %cst_18 = arith.constant 0.000000e+00 : f32
    %27 = vector.broadcast %cst_18 : f32 to vector<16x960xf32>
    %28 = arith.cmpf oge, %26, %27 : vector<16x960xf32>
    %cst_19 = arith.constant 0.00999999977 : f32
    %29 = vector.broadcast %cst_19 : f32 to vector<16x960xf32>
    %30 = arith.mulf %29, %26 : vector<16x960xf32>
    %31 = arith.select %28, %26, %30 : vector<16x960xi1>, vector<16x960xf32>
    %32 = arith.truncf %31 : vector<16x960xf32> to vector<16x960xbf16>
    %c0_20 = arith.constant 0 : index
    %c0_21 = arith.constant 0 : index
    %33 = vector.load %arg8[%c0_20, %c0_21] : memref<960x32xbf16, #tpu.memory_space<vmem>>, vector<960x32xbf16>
    %cst_22 = arith.constant dense<0.000000e+00> : vector<16x32xf32>
    %34 = tpu.matmul %32, %33, %cst_22 {dimension_numbers = #tpu.dot_dimension_numbers<[1], [0], [0], [1], [0, 0, 1, 1], [], []>} : vector<16x960xbf16>, vector<960x32xbf16>, vector<16x32xf32> -> vector<16x32xf32>
    %c0_23 = arith.constant 0 : index
    %c0_24 = arith.constant 0 : index
    %35 = vector.load %arg10[%c0_23, %c0_24] : memref<4x64xf32, #tpu.memory_space<vmem>>, vector<1x32xf32>
    %36 = vector.broadcast %35 : vector<1x32xf32> to vector<16x32xf32>
    %37 = arith.addf %34, %36 : vector<16x32xf32>
    %cst_25 = arith.constant 0.000000e+00 : f32
    %38 = vector.broadcast %cst_25 : f32 to vector<16x32xf32>
    %39 = arith.cmpf oge, %37, %38 : vector<16x32xf32>
    %cst_26 = arith.constant 0.00999999977 : f32
    %40 = vector.broadcast %cst_26 : f32 to vector<16x32xf32>
    %41 = arith.mulf %40, %37 : vector<16x32xf32>
    %42 = arith.select %39, %37, %41 : vector<16x32xi1>, vector<16x32xf32>
    %c0_27 = arith.constant 0 : index
    %c0_28 = arith.constant 0 : index
    %c0_29 = arith.constant 0 : index
    %43 = vector.load %arg3[%c0_27, %c0_28, %c0_29] : memref<1x4x16xf32, #tpu.memory_space<vmem>>, vector<1x4x16xf32>
    %44 = vector.shape_cast %43 : vector<1x4x16xf32> to vector<4x16xf32>
    %cst_30 = arith.constant 0.000000e+00 : f32
    %45 = vector.broadcast %cst_30 : f32 to vector<16x32xf32>
    %46 = arith.maximumf %9, %45 : vector<16x32xf32>
    %cst_31 = arith.constant dense<0.000000e+00> : vector<4x32xf32>
    %47 = tpu.matmul %44, %46, %cst_31 {dimension_numbers = #tpu.dot_dimension_numbers<[1], [0], [0], [1], [0, 0, 1, 1], [], []>} : vector<4x16xf32>, vector<16x32xf32>, vector<4x32xf32> -> vector<4x32xf32>
    %cst_32 = arith.constant 0.000000e+00 : f32
    %48 = vector.broadcast %cst_32 : f32 to vector<16x32xf32>
    %49 = arith.maximumf %42, %48 : vector<16x32xf32>
    %cst_33 = arith.constant dense<0.000000e+00> : vector<4x32xf32>
    %50 = tpu.matmul %44, %49, %cst_33 {dimension_numbers = #tpu.dot_dimension_numbers<[1], [0], [0], [1], [0, 0, 1, 1], [], []>} : vector<4x16xf32>, vector<16x32xf32>, vector<4x32xf32> -> vector<4x32xf32>
    %c0_34 = arith.constant 0 : index
    %c0_35 = arith.constant 0 : index
    %51 = vector.load %arg9[%c0_34, %c0_35] : memref<128x64xf32, #tpu.memory_space<vmem>>, vector<32x32xf32>
    %cst_36 = arith.constant dense<0.000000e+00> : vector<4x32xf32>
    %52 = tpu.matmul %47, %51, %cst_36 {dimension_numbers = #tpu.dot_dimension_numbers<[1], [0], [0], [1], [0, 0, 1, 1], [], []>} : vector<4x32xf32>, vector<32x32xf32>, vector<4x32xf32> -> vector<4x32xf32>
    %c32 = arith.constant 32 : index
    %c0_37 = arith.constant 0 : index
    %53 = vector.load %arg9[%c32, %c0_37] : memref<128x64xf32, #tpu.memory_space<vmem>>, vector<32x32xf32>
    %cst_38 = arith.constant dense<0.000000e+00> : vector<4x32xf32>
    %54 = tpu.matmul %50, %53, %cst_38 {dimension_numbers = #tpu.dot_dimension_numbers<[1], [0], [0], [1], [0, 0, 1, 1], [], []>} : vector<4x32xf32>, vector<32x32xf32>, vector<4x32xf32> -> vector<4x32xf32>
    %55 = arith.addf %52, %54 : vector<4x32xf32>
    %c1 = arith.constant 1 : index
    %c0_39 = arith.constant 0 : index
    %56 = vector.load %arg10[%c1, %c0_39] : memref<4x64xf32, #tpu.memory_space<vmem>>, vector<1x32xf32>
    %57 = vector.broadcast %56 : vector<1x32xf32> to vector<4x32xf32>
    %58 = arith.addf %55, %57 : vector<4x32xf32>
    %c64 = arith.constant 64 : index
    %c0_40 = arith.constant 0 : index
    %59 = vector.load %arg9[%c64, %c0_40] : memref<128x64xf32, #tpu.memory_space<vmem>>, vector<32x32xf32>
    %cst_41 = arith.constant dense<0.000000e+00> : vector<4x32xf32>
    %60 = tpu.matmul %22, %59, %cst_41 {dimension_numbers = #tpu.dot_dimension_numbers<[1], [0], [0], [1], [0, 0, 1, 1], [], []>} : vector<4x32xf32>, vector<32x32xf32>, vector<4x32xf32> -> vector<4x32xf32>
    %c2 = arith.constant 2 : index
    %c0_42 = arith.constant 0 : index
    %61 = vector.load %arg10[%c2, %c0_42] : memref<4x64xf32, #tpu.memory_space<vmem>>, vector<1x32xf32>
    %62 = vector.broadcast %61 : vector<1x32xf32> to vector<4x32xf32>
    %63 = arith.addf %60, %62 : vector<4x32xf32>
    %c96 = arith.constant 96 : index
    %c0_43 = arith.constant 0 : index
    %64 = vector.load %arg9[%c96, %c0_43] : memref<128x64xf32, #tpu.memory_space<vmem>>, vector<32x64xf32>
    %cst_44 = arith.constant dense<0.000000e+00> : vector<4x64xf32>
    %65 = tpu.matmul %58, %64, %cst_44 {dimension_numbers = #tpu.dot_dimension_numbers<[1], [0], [0], [1], [0, 0, 1, 1], [], []>} : vector<4x32xf32>, vector<32x64xf32>, vector<4x64xf32> -> vector<4x64xf32>
    %c3 = arith.constant 3 : index
    %c0_45 = arith.constant 0 : index
    %66 = vector.load %arg10[%c3, %c0_45] : memref<4x64xf32, #tpu.memory_space<vmem>>, vector<1x64xf32>
    %67 = vector.broadcast %66 : vector<1x64xf32> to vector<4x64xf32>
    %68 = arith.addf %65, %67 : vector<4x64xf32>
    %c0_46 = arith.constant 0 : index
    %c0_47 = arith.constant 0 : index
    %c0_48 = arith.constant 0 : index
    %69 = vector.load %arg4[%c0_46, %c0_47, %c0_48] : memref<1x4x32xf32, #tpu.memory_space<vmem>>, vector<1x4x32xf32>
    %70 = vector.shape_cast %69 : vector<1x4x32xf32> to vector<4x32xf32>
    %71 = tpu.concatenate %70, %63, %68 in 1 : vector<4x32xf32>, vector<4x32xf32>, vector<4x64xf32> -> vector<4x128xf32>
    %c0_49 = arith.constant 0 : index
    %c0_50 = arith.constant 0 : index
    %c0_51 = arith.constant 0 : index
    %72 = vector.load %arg11[%c0_49, %c0_50, %c0_51] : memref<1x4x128xf32, #tpu.memory_space<vmem>>, vector<1x4x128xf32>
    %73 = vector.shape_cast %72 : vector<1x4x128xf32> to vector<4x128xf32>
    %74 = vector.shape_cast %71 : vector<4x128xf32> to vector<1x4x128xf32>
    tpu.vector_store %arg11[%c0_49, %c0_50, %c0_51], %74 {strides = array<i32>} : memref<1x4x128xf32, #tpu.memory_space<vmem>>, vector<1x4x128xf32>,
    return
  }
  func.func @transform_0(%arg0: i32) -> (i32, i32) {
    %c0_i32 = arith.constant 0 : i32
    %c0_i32_0 = arith.constant 0 : i32
    return %arg0, %c0_i32 : i32, i32
  }
  func.func @transform_1(%arg0: i32) -> (i32, i32, i32) {
    %c0_i32 = arith.constant 0 : i32
    %c0_i32_0 = arith.constant 0 : i32
    %c0_i32_1 = arith.constant 0 : i32
    return %arg0, %c0_i32, %c0_i32_0 : i32, i32, i32
  }
  func.func @transform_2(%arg0: i32) -> (i32, i32, i32) {
    %c0_i32 = arith.constant 0 : i32
    %c0_i32_0 = arith.constant 0 : i32
    %c0_i32_1 = arith.constant 0 : i32
    return %arg0, %c0_i32, %c0_i32_0 : i32, i32, i32
  }
  func.func @transform_3(%arg0: i32) -> (i32, i32, i32) {
    %c0_i32 = arith.constant 0 : i32
    %c0_i32_0 = arith.constant 0 : i32
    %c0_i32_1 = arith.constant 0 : i32
    return %arg0, %c0_i32, %c0_i32_0 : i32, i32, i32
  }
  func.func @transform_4(%arg0: i32) -> (i32, i32) {
    %c0_i32 = arith.constant 0 : i32
    %c0_i32_0 = arith.constant 0 : i32
    %c0_i32_1 = arith.constant 0 : i32
    return %c0_i32, %c0_i32_0 : i32, i32
  }
  func.func @transform_5(%arg0: i32) -> (i32, i32) {
    %c0_i32 = arith.constant 0 : i32
    %c0_i32_0 = arith.constant 0 : i32
    %c0_i32_1 = arith.constant 0 : i32
    return %c0_i32, %c0_i32_0 : i32, i32
  }
  func.func @transform_6(%arg0: i32) -> (i32, i32) {
    %c0_i32 = arith.constant 0 : i32
    %c0_i32_0 = arith.constant 0 : i32
    %c0_i32_1 = arith.constant 0 : i32
    return %c0_i32, %c0_i32_0 : i32, i32
  }
  func.func @transform_7(%arg0: i32) -> (i32, i32) {
    %c0_i32 = arith.constant 0 : i32
    %c0_i32_0 = arith.constant 0 : i32
    %c0_i32_1 = arith.constant 0 : i32
    return %c0_i32, %c0_i32_0 : i32, i32
  }
  func.func @transform_8(%arg0: i32) -> (i32, i32) {
    %c0_i32 = arith.constant 0 : i32
    %c0_i32_0 = arith.constant 0 : i32
    %c0_i32_1 = arith.constant 0 : i32
    return %c0_i32, %c0_i32_0 : i32, i32
  }
  func.func @transform_9(%arg0: i32) -> (i32, i32) {
    %c0_i32 = arith.constant 0 : i32
    %c0_i32_0 = arith.constant 0 : i32
    %c0_i32_1 = arith.constant 0 : i32
    return %c0_i32, %c0_i32_0 : i32, i32
  }
  func.func @transform_10(%arg0: i32) -> (i32, i32, i32) {
    %c0_i32 = arith.constant 0 : i32
    %c0_i32_0 = arith.constant 0 : i32
    %c0_i32_1 = arith.constant 0 : i32
    return %arg0, %c0_i32, %c0_i32_0 : i32, i32, i32
  }
}

</mosaic_0001>

<bundles_post_ra>
// kernel: pallas_forward.1
= control target key start
LH: loop header
LB: loop body
LE: loop exit
PB: predicated region body
PF: predicated region fallthrough
CT: control target
= control target key end

     0   :  { %s2781_s13 = smov 0   ;;  %s3408_s0 = inlined_call_operand.vmem [shape: bf16[576,128], index: 0, kind: input, shape index: {}]   ;;  %s3409_s1 = inlined_call_operand.vmem [shape: bf16[2,16,40], index: 1, kind: input, shape index: {}]   ;;  %s3410_s2 = inlined_call_operand.vmem [shape: f32[2,4,16], index: 2, kind: input, shape index: {}]   ;;  %s3411_s3 = inlined_call_operand.vmem [shape: f32[2,4,32], index: 3, kind: input, shape index: {}]   ;;  %s3412_s4 = inlined_call_operand.vmem [shape: bf16[128,32], index: 4, kind: input, shape index: {}]   ;;  %s3413_s5 = inlined_call_operand.vmem [shape: f32[16,288], index: 5, kind: input, shape index: {}]   ;;  %s3414_s6 = inlined_call_operand.vmem [shape: bf16[40,960], index: 6, kind: input, shape index: {}]   ;;  %s3415_s7 = inlined_call_operand.vmem [shape: bf16[960,32], index: 7, kind: input, shape index: {}]   ;;  %s3416_s8 = inlined_call_operand.vmem [shape: f32[128,64], index: 8, kind: input, shape index: {}]   ;;  %s3417_s9 = inlined_call_operand.vmem [shape: f32[4,64], index: 9, kind: input, shape index: {}]   ;;  %s3418_s10 = inlined_call_operand.vmem [shape: f32[2,4,128], index: 10, kind: output, shape index: {}]  }
   0x1 LB: > { %s2787_s14 = sadd.s32 4294967295, %s2722_s13   ;;  %p2152_p0 = scmp.ge.s32.totalorder %s2722_s13, 1  ;;  %s2722_s13 = sphi %s2781_s13, %s20_s13  }
   0x2   : > { %p341_p1 = scmp.lt.s32.totalorder %s2722_s13, 3 }
   0x4   : > { %p342_p2 = pnand %p2152_p0, %p341_p1 }
   0x5   : > { %s391_s23 = smul.u32 (!%p342_p2), 36, %s2787_s14  ;;  %p397_p4 = scmp.lt.s32.totalorder (!%p342_p2), %s2787_s14, 1 }
   0x6   : > { %345 = sbr.rel (%p342_p2) target bundleno = 1223 (0x4c7), region = 60  ;;  %s2724_s16 = smov (!%p342_p2), 32  }
   0x7   : > { %p392_p3 = scmp.lt.s32.totalorder (!%p342_p2), %s391_s23, 71  ;;  %s2725_s18 = smov (!%p342_p2), 64  }
   0xb   : > { %v2616_v0 = vld [vmem:[%s3412_s4 + $0x38] sm:$0xff]  ;;  %v2615_v1 = vld [vmem:[%s3412_s4 + $0x30] sm:$0xff]  ;;  %v2614_v2 = vld [vmem:[%s3412_s4 + $0x28] sm:$0xff]  ;;  %s3420_s23 = smov (!%p392_p3, %s391_s23), 71  ;;  %vm913_vm2 = vcmask 259072   ;;  %vm836_vm3 = vcmask 261120  }
   0xc   : > { %623 = vmatpush.bf16.msra.mxu0 %v2616_v0  ;;  %2694 = vmatpush.bf16.msra.mxu2 %v2616_v0  ;;  %v2613_v3 = vld [vmem:[%s3412_s4 + $0x20] sm:$0xff]  ;;  %v2612_v4 = vld [vmem:[%s3412_s4 + $0x18] sm:$0xff]  ;;  %v2611_v5 = vld [vmem:[%s3412_s4 + $0x10] sm:$0xff]  ;;  %s2153_s30 = sshll.u32 %s3420_s23, 2  ;;  %s3422_s14 = smov (!%p397_p4, %s2787_s14), 1 }
   0xd   : > { %v2610_v6 = vld [vmem:[%s3412_s4 + $0x8] sm:$0xff]  ;;  %v2609_v7 = vld [vmem:[%s3412_s4] sm:$0xff]  ;;  %s2819_s17 = scalar_lea.vmem %s3408_s0, %s2153_s30  ;;  %s2590_s12 = sshll.u32 %s3422_s14, 3 }
   0xe   : > { %v2591_v8 = vld [vmem:[%s2819_s17] sm:$0xff]  ;;  %v2592_v10 = vld [vmem:[%s2819_s17 + $0x8] sm:$0xff]  ;;  %v2593_v12 = vld [vmem:[%s2819_s17 + $0x10] sm:$0xff]  ;;  %s401_s19 = scalar_lea.vmem %s3409_s1, %s2590_s12  ;;  %s3325_s30 = sshll.u32 %s3422_s14, 2 }
   0xf   : > { %v2603_v9 = vld [vmem:[%s2819_s17 + $0x60] sm:$0xff]  ;;  %v2604_v11 = vld [vmem:[%s2819_s17 + $0x68] sm:$0xff]  ;;  %v2605_v13 = vld [vmem:[%s2819_s17 + $0x70] sm:$0xff]  ;;  %s405_s15 = scalar_lea.vmem %s3410_s2, %s3325_s30  ;;  %s409_s21 = scalar_lea.vmem %s3411_s3, %s3325_s30 }
  0x10   : > { %624 = vmatpush.bf16.msra.mxu0 %v2615_v1  ;;  %2695 = vmatpush.bf16.msra.mxu2 %v2615_v1  ;;  %v2594_v14 = vld [vmem:[%s2819_s17 + $0x18] sm:$0xff]  ;;  %v2595_v16 = vld [vmem:[%s2819_s17 + $0x20] sm:$0xff]  ;;  %v2596_v18 = vld [vmem:[%s2819_s17 + $0x28] sm:$0xff]  ;;  %s413_s24 = scalar_lea.vmem %s3418_s10, %s3325_s30 }
  0x11   : > { %v2606_v15 = vld [vmem:[%s2819_s17 + $0x78] sm:$0xff]  ;;  %v2607_v17 = vld [vmem:[%s2819_s17 + $0x80] sm:$0xff]  ;;  %v2608_v19 = vld [vmem:[%s2819_s17 + $0x88] sm:$0xff] }
  0x12   : > { %v2597_v20 = vld [vmem:[%s2819_s17 + $0x30] sm:$0xff]  ;;  %v2598_v21 = vld [vmem:[%s2819_s17 + $0x38] sm:$0xff]  ;;  %v2599_v22 = vld [vmem:[%s2819_s17 + $0x40] sm:$0xff] }
  0x13   : > { %v2600_v27 = vld [vmem:[%s2819_s17 + $0x48] sm:$0xff]  ;;  %v2601_v32 = vld [vmem:[%s2819_s17 + $0x50] sm:$0xff]  ;;  %v2602_v44 = vld [vmem:[%s2819_s17 + $0x58] sm:$0xff] }
  0x14   : > { %625 = vmatpush.bf16.msra.mxu0 %v2614_v2  ;;  %2696 = vmatpush.bf16.msra.mxu2 %v2614_v2 }
  0x18   : > { %626 = vmatpush.bf16.msra.mxu0 %v2613_v3  ;;  %2697 = vmatpush.bf16.msra.mxu2 %v2613_v3 }
  0x1c   : > { %627 = vmatpush.bf16.msra.mxu0 %v2612_v4  ;;  %2698 = vmatpush.bf16.msra.mxu2 %v2612_v4 }
  0x20   : > { %628 = vmatpush.bf16.msra.mxu0 %v2611_v5  ;;  %2699 = vmatpush.bf16.msra.mxu2 %v2611_v5 }
  0x24   : > { %629 = vmatpush.bf16.msra.mxu0 %v2610_v6  ;;  %2700 = vmatpush.bf16.msra.mxu2 %v2610_v6 }
  0x28   : > { %630 = vmatpush.bf16.msra.mxu0 %v2609_v7  ;;  %2701 = vmatpush.bf16.msra.mxu2 %v2609_v7 }
  0x2b   : > { %631 = vmatmul.bf16.vlgmr.msra.gmra.mxu0 %v2591_v8  ;;  %691 = vmatmul.bf16.vlgmr.msra.gmra.mxu2 %v2603_v9 }
  0x3b   : > { %636 = vmatmul.bf16.gmra.mxu0 %v2592_v10  ;;  %696 = vmatmul.bf16.gmra.mxu2 %v2604_v11  ;;  %v973_v11 = vld [vmem:[%s3414_s6 + $0x80] sm:$0xff] }
  0x4b   : > { %641 = vmatmul.bf16.gmra.mxu0 %v2593_v12  ;;  %701 = vmatmul.bf16.gmra.mxu2 %v2605_v13 }
  0x5b   : > { %646 = vmatmul.bf16.gmra.mxu0 %v2594_v14  ;;  %706 = vmatmul.bf16.gmra.mxu2 %v2606_v15 }
  0x6b   : > { %651 = vmatmul.bf16.gmra.mxu0 %v2595_v16  ;;  %711 = vmatmul.bf16.gmra.mxu2 %v2607_v17  ;;  %v1034_v16 = vunpack.c.l.b16 %v973_v11 }
  0x7b   : > { %656 = vmatmul.bf16.gmra.mxu0 %v2596_v18  ;;  %716 = vmatmul.bf16.gmra.mxu2 %v2608_v19 }
  0x8b   : > { %661 = vmatmul.bf16.gmra.mxu0 %v2597_v20 }
  0x9b   : > { %666 = vmatmul.bf16.gmra.mxu0 %v2598_v21 }
  0xa8   : > { %v2836_v23 = vpop.f32.mrf.mxu0 }
  0xab   : > { %671 = vmatmul.bf16.gmra.mxu0 %v2599_v22  ;;  %v1058_v22 = vpack.c.b16 %v1034_v16, %v1034_v16 }
  0xae   : > { %v2838_v24 = vpop.f32.mrf.mxu2 }
  0xaf   : > { %v782_v61 = vmul.f32 0.01, %v2838_v24  ;;  %vm746_vm9 = vcmp.ge.f32.partialorder %v2838_v24, 0.0 }
  0xb0   : > { %v2840_v25 = vpop.f32.mrf.mxu0 }
  0xb1   : > { %v818_v1 = vsel %vm746_vm9, %v2838_v24, %v782_v61 }
  0xb6   : > { %v694_v26 = vpop.f32.mrf.mxu2 }
  0xb7   : > { %v783_v58 = vmul.f32 0.01, %v694_v26  ;;  %vm747_vm8 = vcmp.ge.f32.partialorder %v694_v26, 0.0 }
  0xb8   : > { %v2843_v28 = vpop.f32.mrf.mxu0 }
  0xb9   : > { %v819_v62 = vsel %vm747_vm8, %v694_v26, %v783_v58  ;;  %v832_v26 = vld [vmem:[%s3413_s5 + $0x10] sm:$0xff] }
  0xbb   : > { %676 = vmatmul.bf16.gmra.mxu0 %v2600_v27 }
  0xbe   : > { %v697_v29 = vpop.f32.mrf.mxu2 }
  0xbf   : > { %v784_v56 = vmul.f32 0.01, %v697_v29  ;;  %vm748_vm7 = vcmp.ge.f32.partialorder %v697_v29, 0.0 }
  0xc0   : > { %v2845_v30 = vpop.f32.mrf.mxu0 }
  0xc1   : > { %v820_v60 = vsel %vm748_vm7, %v697_v29, %v784_v56  ;;  %v2303_v29 = vld [vmem:[%s3414_s6 + $0x40] sm:$0xf] }
  0xc6   : > { %v699_v31 = vpop.f32.mrf.mxu2 }
  0xc7   : > { %v785_v34 = vmul.f32 0.01, %v699_v31  ;;  %vm749_vm1 = vcmp.ge.f32.partialorder %v699_v31, 0.0 }
  0xc8   : > { %v2848_v33 = vpop.f32.mrf.mxu0 }
  0xc9   : > { %v821_v39 = vsel %vm749_vm1, %v699_v31, %v785_v34  ;;  %v2630_v31 = vld [vmem:[%s3414_s6 + $0x5c] sm:$0xf0]  ;;  %vm1082_vm1 = vcmask 326656  }
  0xca   : > { %v940_v41 = vsel %vm836_vm3, %v821_v39, -inf  ;;  %v2304_v34 = vor.u32 %v2630_v31, %v2303_v29 }
  0xcb   : > { %681 = vmatmul.bf16.gmra.mxu0 %v2601_v32 }
  0xce   : > { %v702_v35 = vpop.f32.mrf.mxu2 }
  0xcf   : > { %v786_v36 = vmul.f32 0.01, %v702_v35  ;;  %vm750_vm0 = vcmp.ge.f32.partialorder %v702_v35, 0.0 }
  0xd0   : > { %v2850_v37 = vpop.f32.mrf.mxu0 }
  0xd1   : > { %v822_v38 = vsel %vm750_vm0, %v702_v35, %v786_v36  ;;  %vm1086_vm0 = vcmask 1043456   ;;  %v1035_v35 = vunpack.c.h.b16 %v973_v11  ;;  %v2271_v36 = vld [vmem:[%s3414_s6] sm:$0xf] }
  0xd2   : > { %v941_v40 = vsel %vm913_vm2, %v822_v38, -inf  ;;  %v1088_v27 = vsel %vm1086_vm0, %v1058_v22, 0 }
  0xd3   : > { %v2854_v42 = vmax.f32 %v940_v41, %v941_v40  ;;  %v835_v40 = vld [vmem:[%s3413_s5 + $0x28] sm:$0xff] }
  0xd5   : > { %v943_v31 = vrot.slane %v2854_v42, 4 }
  0xd6   : > { %v704_v43 = vpop.f32.mrf.mxu2 }
  0xd7   : > { %v787_v50 = vmul.f32 0.01, %v704_v43  ;;  %vm751_vm6 = vcmp.ge.f32.partialorder %v704_v43, 0.0 }
  0xd8   : > { %v2857_v45 = vpop.f32.mrf.mxu0 }
  0xd9   : > { %v823_v55 = vsel %vm751_vm6, %v704_v43, %v787_v50  ;;  %v2919_v50 = vld [vmem:[%s401_s19] sm:$0xff] }
  0xdb   : > { %686 = vmatmul.bf16.gmra.mxu0 %v2602_v44 }
  0xde   : > { %v707_v46 = vpop.f32.mrf.mxu2 }
  0xdf   : > { %v788_v48 = vmul.f32 0.01, %v707_v46  ;;  %vm752_vm4 = vcmp.ge.f32.partialorder %v707_v46, 0.0 }
  0xe0   : > { %v2859_v47 = vpop.f32.mrf.mxu0 }
  0xe1   : > { %v824_v54 = vsel %vm752_vm4, %v707_v46, %v788_v48  ;;  %v2626_v46 = vld [vmem:[%s3414_s6 + $0x44] sm:$0xf] }
  0xe2   : > { %v2305_v48 = vld [vmem:[%s3414_s6 + $0x60] sm:$0xf0] }
  0xe6   : > { %v709_v49 = vpop.f32.mrf.mxu2 }
  0xe7   : > { %v789_v51 = vmul.f32 0.01, %v709_v49  ;;  %vm753_vm5 = vcmp.ge.f32.partialorder %v709_v49, 0.0 }
  0xe8   : > { %v2861_v52 = vpop.f32.mrf.mxu0 }
  0xe9   : > { %v825_v53 = vsel %vm753_vm5, %v709_v49, %v789_v51  ;;  %v2308_v49 = vor.u32 %v2626_v46, %v2305_v48  ;;  %v2618_v51 = vld [vmem:[%s3414_s6 + $0x4] sm:$0xf]  ;;  %vm730_vm9 = vcmp.ge.f32.partialorder %v2861_v52, 0.0 }
  0xea   : > { %866 = vmatpush.msrb.mxu2 %v825_v53  ;;  %v2273_v53 = vld [vmem:[%s3414_s6 + $0x20] sm:$0xf0] }
  0xec   : > { %867 = vmatpush.msrb.mxu2 %v824_v54  ;;  %v2276_v54 = vor.u32 %v2618_v51, %v2273_v53 }
  0xee   : > { %868 = vmatpush.msrb.mxu2 %v823_v55  ;;  %v712_v57 = vpop.f32.mrf.mxu2 }
  0xef   : > { %v790_v18 = vmul.f32 0.01, %v712_v57  ;;  %vm754_vm15 = vcmp.ge.f32.partialorder %v712_v57, 0.0 }
  0xf0   : > { %v654_v59 = vpop.f32.mrf.mxu0  ;;  %869 = vmatpush.msrb.mxu2 %v822_v38  ;;  %v2622_v38 = vld [vmem:[%s3414_s6 + $0x1c] sm:$0xf0] }
  0xf1   : > { %v767_v63 = vmul.f32 0.01, %v654_v59  ;;  %vm731_vm10 = vcmp.ge.f32.partialorder %v654_v59, 0.0  ;;  %v826_v24 = vsel %vm754_vm15, %v712_v57, %v790_v18  ;;  %v2272_v41 = vor.u32 %v2622_v38, %v2271_v36 }
  0xf2   : > { %870 = vmatpush.msrb.mxu2 %v821_v39  ;;  %v1059_v39 = vpack.c.b16 %v1035_v35, %v1035_v35  ;;  %vm726_vm15 = vcmp.ge.f32.partialorder %v2848_v33, 0.0  ;;  %v830_v35 = vld [vmem:[%s3413_s5] sm:$0xff] }
  0xf3   : > { %v2866_v4 = vsel %vm731_vm10, %v654_v59, %v767_v63  ;;  %vm723_vm10 = vcmp.ge.f32.partialorder %v2840_v25, 0.0 }
  0xf4   : > { %871 = vmatpush.msrb.mxu2 %v820_v60  ;;  %v922_v7 = vsel %vm836_vm3, %v2866_v4, -inf  ;;  %v1091_v44 = vsel %vm1086_vm0, %v1059_v39, 0  ;;  %v944_v39 = vmax.f32 %v2854_v42, %v943_v31  ;;  %v2623_v42 = vld [vmem:[%s3414_s6 + $0x24] sm:$0xf0] }
  0xf6   : > { %872 = vmatpush.msrb.mxu2 %v819_v62  ;;  %v714_v0 = vpop.f32.mrf.mxu2  ;;  %v945_v53 = vrot.slane %v944_v39, 2 }
  0xf7   : > { %v791_v14 = vmul.f32 0.01, %v714_v0  ;;  %vm755_vm14 = vcmp.ge.f32.partialorder %v714_v0, 0.0 }
  0xf8   : > { %v657_v2 = vpop.f32.mrf.mxu0  ;;  %873 = vmatpush.msrb.mxu2 %v818_v1 }
  0xf9   : > { %v768_v3 = vmul.f32 0.01, %v657_v2  ;;  %vm732_vm11 = vcmp.ge.f32.partialorder %v657_v2, 0.0  ;;  %v827_v21 = vsel %vm755_vm14, %v714_v0, %v791_v14  ;;  %vm727_vm14 = vcmp.ge.f32.partialorder %v2850_v37, 0.0 }
  0xfb   : > { %v2868_v5 = vsel %vm732_vm11, %v657_v2, %v768_v3  ;;  %v766_v3 = vmul.f32 0.01, %v2861_v52  ;;  %vm729_vm11 = vcmp.ge.f32.partialorder %v2859_v47, 0.0 }
  0xfc   : > { %v923_v6 = vsel %vm913_vm2, %v2868_v5, -inf }
  0xfd   : > { %v2874_v8 = vmax.f32 %v922_v7, %v923_v6  ;;  %v759_v6 = vmul.f32 0.01, %v2840_v25  ;;  %v765_v7 = vmul.f32 0.01, %v2859_v47 }
  0xfe   : > { %v717_v9 = vpop.f32.mrf.mxu2 }
  0xff   : > { %v792_v12 = vmul.f32 0.01, %v717_v9  ;;  %vm756_vm12 = vcmp.ge.f32.partialorder %v717_v9, 0.0  ;;  %v925_v22 = vrot.slane %v2874_v8, 4 }
 0x100   : > { %v2876_v10 = vpop.f32.mrf.mxu0 }
 0x101   : > { %v828_v20 = vsel %vm756_vm12, %v717_v9, %v792_v12  ;;  %v769_v62 = vmul.f32 0.01, %v2876_v10  ;;  %vm733_vm8 = vcmp.ge.f32.partialorder %v2876_v10, 0.0  ;;  %v758_v9 = vmul.f32 0.01, %v2836_v23 }
 0x102   : > { %v802_v12 = vsel %vm730_vm9, %v2861_v52, %v766_v3  ;;  %vm722_vm12 = vcmp.ge.f32.partialorder %v2836_v23, 0.0  ;;  %v762_v52 = vmul.f32 0.01, %v2848_v33  ;;  %vm953_vm9 = vcmask 1042432  }
 0x103   : > { %v805_v2 = vsel %vm733_vm8, %v2876_v10, %v769_v62  ;;  %v764_v10 = vmul.f32 0.01, %v2857_v45  ;;  %v794_v14 = vsel %vm722_vm12, %v2836_v23, %v758_v9  ;;  %vm951_vm8 = vcmask 1041408  }
 0x104   : > { %v912_v23 = vsel %vm836_vm3, %v794_v14, -inf }
 0x106   : > { %v719_v13 = vpop.f32.mrf.mxu2 }
 0x107   : > { %v793_v15 = vmul.f32 0.01, %v719_v13  ;;  %vm757_vm13 = vcmp.ge.f32.partialorder %v719_v13, 0.0 }
 0x108   : > { %v2881_v17 = vpop.f32.mrf.mxu0 }
 0x109   : > { %v829_v19 = vsel %vm757_vm13, %v719_v13, %v793_v15  ;;  %v770_v60 = vmul.f32 0.01, %v2881_v17  ;;  %vm734_vm7 = vcmp.ge.f32.partialorder %v2881_v17, 0.0  ;;  %vm728_vm13 = vcmp.ge.f32.partialorder %v2857_v45, 0.0 }
 0x10a   : > { %901 = vmatpush.msra.mxu3 %v829_v19  ;;  %v763_v13 = vmul.f32 0.01, %v2850_v37  ;;  %v800_v15 = vsel %vm728_vm13, %v2857_v45, %v764_v10  ;;  %v760_v19 = vmul.f32 0.01, %v2843_v28 }
 0x10b   : > { %v806_v1 = vsel %vm734_vm7, %v2881_v17, %v770_v60 }
 0x10c   : > { %902 = vmatpush.msra.mxu3 %v828_v20  ;;  %v799_v17 = vsel %vm727_vm14, %v2850_v37, %v763_v13  ;;  %v798_v20 = vsel %vm726_vm15, %v2848_v33, %v762_v52 }
 0x10e   : > { %903 = vmatpush.msra.mxu3 %v827_v21 }
 0x110   : > { %v664_v32 = vpop.f32.mrf.mxu0  ;;  %904 = vmatpush.msra.mxu3 %v826_v24 }
 0x111   : > { %2263 = vmatmul.msk.f32.vlgmr.msra.gmra.mxu3 %vm836_vm3, %v832_v26  ;;  %v771_v58 = vmul.f32 0.01, %v664_v32  ;;  %vm735_vm6 = vcmp.ge.f32.partialorder %v664_v32, 0.0 }
 0x112   : > { %1116 = vmatpush.bf16.msrb.mxu3 %v1088_v27 }
 0x113   : > { %v807_v63 = vsel %vm735_vm6, %v664_v32, %v771_v58  ;;  %v926_v32 = vmax.f32 %v2874_v8, %v925_v22  ;;  %v2631_v8 = vld [vmem:[%s3414_s6 + $0x64] sm:$0xf0]  ;;  %v833_v58 = vld [vmem:[%s3413_s5 + $0x18] sm:$0xff] }
 0x114   : > { %v3034_v22 = vld [vmem:[%s3414_s6 + $0x98] sm:$0xff] }
 0x116   : > { %1117 = vmatpush.bf16.msrb.mxu3 %v2304_v34 }
 0x118   : > { %v667_v43 = vpop.f32.mrf.mxu0 }
 0x119   : > { %2264 = vmatmul.msk.f32.gmra.mxu3 %vm836_vm3, %v835_v40  ;;  %v772_v56 = vmul.f32 0.01, %v667_v43  ;;  %vm736_vm5 = vcmp.ge.f32.partialorder %v667_v43, 0.0  ;;  %v927_v40 = vrot.slane %v926_v32, 2 }
 0x11a   : > { %1118 = vmatpush.bf16.msrb.mxu3 %v2272_v41 }
 0x11b   : > { %v808_v61 = vsel %vm736_vm5, %v667_v43, %v772_v56  ;;  %vm724_vm5 = vcmp.ge.f32.partialorder %v2843_v28, 0.0 }
 0x11c   : > { %v796_v27 = vsel %vm724_vm5, %v2843_v28, %v760_v19  ;;  %v2624_v19 = vld [vmem:[%s3414_s6 + $0x2c] sm:$0xf0] }
 0x11e   : > { %1130 = vmatpush.bf16.msra.mxu3 %v1091_v44 }
 0x120   : > { %v669_v55 = vpop.f32.mrf.mxu0 }
 0x121   : > { %v773_v57 = vmul.f32 0.01, %v669_v55  ;;  %vm737_vm4 = vcmp.ge.f32.partialorder %v669_v55, 0.0  ;;  %2333 = vmatmul.msk.bf16.vlgmr.msrb.gmra.mxu3 %vm1082_vm1, %v2919_v50 }
 0x122   : > { %1131 = vmatpush.bf16.msra.mxu3 %v2308_v49  ;;  %v2279_v49 = vld [vmem:[%s3414_s6 + $0x8] sm:$0xf] }
 0x123   : > { %v809_v59 = vsel %vm737_vm4, %v669_v55, %v773_v57  ;;  %vm725_vm4 = vcmp.ge.f32.partialorder %v2845_v30, 0.0 }
 0x124   : > { %843 = vmatpush.msra.mxu1 %v809_v59  ;;  %v2280_v59 = vor.u32 %v2623_v42, %v2279_v49  ;;  %v2621_v42 = vld [vmem:[%s3414_s6 + $0x1c] sm:$0xf] }
 0x126   : > { %1132 = vmatpush.bf16.msra.mxu3 %v2276_v54  ;;  %844 = vmatpush.msra.mxu1 %v808_v61  ;;  %v928_v54 = vmax.f32 %v926_v32, %v927_v40  ;;  %v946_v61 = vmax.f32 %v944_v39, %v945_v53  ;;  %v2629_v40 = vld [vmem:[%s3414_s6 + $0x5c] sm:$0xf] }
 0x128   : > { %v2932_v0 = vpop.f32.mrf.mxu0  ;;  %845 = vmatpush.msra.mxu1 %v807_v63  ;;  %v929_v62 = vrot.slane %v928_v54, 1 }
 0x129   : > { %vm738_vm15 = vcmp.ge.f32.partialorder %v2932_v0, 0.0 }
 0x12a   : > { %846 = vmatpush.msra.mxu1 %v806_v1  ;;  %v930_v9 = vmax.f32 %v928_v54, %v929_v62 }
 0x12c   : > { %847 = vmatpush.msra.mxu1 %v805_v2  ;;  %v975_v2 = vld [vmem:[%s3414_s6 + $0x90] sm:$0xff] }
 0x12e   : > { %848 = vmatpush.msra.mxu1 %v2868_v5  ;;  %v795_v5 = vsel %vm723_vm10, %v2840_v25, %v759_v6  ;;  %v2966_v25 = vld [vmem:[%s3414_s6 + $0x88] sm:$0xff]  ;;  %v1038_v6 = vunpack.c.l.b16 %v975_v2 }
 0x12f   : > { %v914_v16 = vsel %vm913_vm2, %v795_v5, -inf  ;;  %v1036_v21 = vunpack.c.l.b16 %v2966_v25 }
 0x130   : > { %v2944_v11 = vpop.f32.mrf.mxu0  ;;  %849 = vmatpush.msra.mxu1 %v2866_v4  ;;  %v801_v4 = vsel %vm729_vm11, %v2859_v47, %v765_v7  ;;  %v761_v47 = vmul.f32 0.01, %v2845_v30  ;;  %v915_v45 = vmax.f32 %v912_v23, %v914_v16  ;;  %v947_v7 = vrot.slane %v946_v61, 1  ;;  %v2319_v16 = vld [vmem:[%s3414_s6 + $0x50] sm:$0xf] }
 0x131   : > { %2334 = vmatmul.msk.bf16.vlgmr.msra.gmra.mxu3 %vm1082_vm1, %v2919_v50  ;;  %v1060_v29 = vpack.c.b16 %v1036_v21, %v1036_v21  ;;  %vm739_vm14 = vcmp.ge.f32.partialorder %v2944_v11, 0.0 }
 0x132   : > { %850 = vmatpush.msra.mxu1 %v802_v12  ;;  %v797_v37 = vsel %vm725_vm4, %v2845_v30, %v761_v47  ;;  %v916_v24 = vrot.slane %v915_v45, 4  ;;  %v2311_v30 = vld [vmem:[%s3414_s6 + $0x48] sm:$0xf]  ;;  %v1062_v12 = vpack.c.b16 %v1038_v6, %v1038_v6  ;;  %v948_v52 = vmax.f32 %v946_v61, %v947_v7  ;;  %v2632_v47 = vld [vmem:[%s3414_s6 + $0x6c] sm:$0xf0] }
 0x133   : > { %v1094_v28 = vsel %vm1086_vm0, %v1060_v29, 0  ;;  %v2312_v44 = vor.u32 %v2631_v8, %v2311_v30  ;;  %v2320_v23 = vor.u32 %v2632_v47, %v2319_v16  ;;  %v2281_v6 = vld [vmem:[%s3414_s6 + $0x28] sm:$0xf0]  ;;  %v2648_v7 = vld [vmem:[%s3415_s7 + $0x70] sm:$0xff]  ;;  %v2646_v16 = vld [vmem:[%s3415_s7 + $0x60] sm:$0xff] }
 0x134   : > { %851 = vmatpush.msra.mxu1 %v801_v4  ;;  %v917_v34 = vmax.f32 %v915_v45, %v916_v24  ;;  %v2287_v45 = vld [vmem:[%s3414_s6 + $0x10] sm:$0xf]  ;;  %v1039_v24 = vunpack.c.h.b16 %v975_v2  ;;  %v2641_v2 = vld [vmem:[%s3415_s7 + $0x38] sm:$0xff] }
 0x135   : > { %v2288_v21 = vor.u32 %v2624_v19, %v2287_v45  ;;  %v2295_v47 = vld [vmem:[%s3414_s6 + $0x18] sm:$0xf] }
 0x136   : > { %852 = vmatpush.msra.mxu1 %v800_v15  ;;  %v918_v43 = vrot.slane %v917_v34, 2  ;;  %v1063_v32 = vpack.c.b16 %v1039_v24, %v1039_v24  ;;  %v2645_v19 = vld [vmem:[%s3415_s7 + $0x58] sm:$0xff]  ;;  %v2642_v24 = vld [vmem:[%s3415_s7 + $0x40] sm:$0xff] }
 0x138   : > { %v677_v18 = vpop.f32.mrf.mxu0  ;;  %853 = vmatpush.msra.mxu1 %v799_v17  ;;  %v919_v56 = vmax.f32 %v917_v34, %v918_v43  ;;  %v1103_v30 = vsel %vm1086_vm0, %v1063_v32, 0 }
 0x139   : > { %v776_v26 = vmul.f32 0.01, %v677_v18  ;;  %vm740_vm6 = vcmp.ge.f32.partialorder %v677_v18, 0.0 }
 0x13a   : > { %854 = vmatpush.msra.mxu1 %v798_v20  ;;  %v920_v1 = vrot.slane %v919_v56, 1 }
 0x13b   : > { %v2991_v38 = vsel %vm740_vm6, %v677_v18, %v776_v26 }
 0x13c   : > { %855 = vmatpush.msra.mxu1 %v797_v37  ;;  %v931_v48 = vsel %vm836_vm3, %v2991_v38, -inf  ;;  %v1041_v37 = vunpack.c.h.b16 %v3034_v22 }
 0x13e   : > { %856 = vmatpush.msra.mxu1 %v796_v27  ;;  %v1065_v26 = vpack.c.b16 %v1041_v37, %v1041_v37  ;;  %v2637_v37 = vld [vmem:[%s3415_s7 + $0x18] sm:$0xff] }
 0x140   : > { %v679_v33 = vpop.f32.mrf.mxu0  ;;  %857 = vmatpush.msra.mxu1 %v795_v5  ;;  %v921_v5 = vmax.f32 %v919_v56, %v920_v1  ;;  %v2649_v1 = vld [vmem:[%s3415_s7 + $0x78] sm:$0xff] }
 0x141   : > { %v777_v36 = vmul.f32 0.01, %v679_v33  ;;  %vm741_vm7 = vcmp.ge.f32.partialorder %v679_v33, 0.0 }
 0x142   : > { %858 = vmatpush.msra.mxu1 %v794_v14  ;;  %v1100_v14 = vsel %vm1086_vm0, %v1062_v12, 0 }
 0x143   : > { %859 = vmatmul.f32.vlgmr.msra.gmra.mxu1 %v830_v35  ;;  %v2994_v41 = vsel %vm741_vm7, %v679_v33, %v777_v36  ;;  %1172 = vmatpush.bf16.msrb.mxu3 %v1100_v14  ;;  %v1109_v33 = vsel %vm1086_vm0, %v1065_v26, 0  ;;  %v2628_v36 = vld [vmem:[%s3414_s6 + $0x54] sm:$0xf]  ;;  %v2633_v14 = vld [vmem:[%s3414_s6 + $0x74] sm:$0xf0] }
 0x144   : > { %1144 = vmatpush.bf16.msrb.mxu1 %v1094_v28  ;;  %v932_v46 = vsel %vm913_vm2, %v2994_v41, -inf  ;;  %vm949_vm2 = vcmask 1040384   ;;  %v2321_v28 = vld [vmem:[%s3414_s6 + $0x70] sm:$0xf0]  ;;  %v2657_v26 = vld [vmem:[%s3415_s7 + $0xb8] sm:$0xff] }
 0x145   : > { %v933_v51 = vmax.f32 %v931_v48, %v932_v46  ;;  %v950_v15 = vsel %vm949_vm2, %v921_v5, %v930_v9  ;;  %v2324_v39 = vor.u32 %v2628_v36, %v2321_v28  ;;  %v2289_v46 = vld [vmem:[%s3414_s6 + $0x30] sm:$0xf0]  ;;  %v2329_v48 = vld [vmem:[%s3414_s6 + $0x78] sm:$0xf0]  ;;  %v2647_v5 = vld [vmem:[%s3415_s7 + $0x68] sm:$0xff] }
 0x146   : > { %v2332_v49 = vor.u32 %v2629_v40, %v2329_v48  ;;  %v2665_v36 = vld [vmem:[%s3415_s7 + $0xf8] sm:$0xff]  ;;  %v2652_v28 = vld [vmem:[%s3415_s7 + $0x90] sm:$0xff]  ;;  %v2651_v40 = vld [vmem:[%s3415_s7 + $0x88] sm:$0xff] }
 0x147   : > { %v934_v55 = vrot.slane %v933_v51, 4  ;;  %1173 = vmatpush.bf16.msrb.mxu3 %v2320_v23  ;;  %v2639_v23 = vld [vmem:[%s3415_s7 + $0x28] sm:$0xff]  ;;  %v2662_v48 = vld [vmem:[%s3415_s7 + $0xe0] sm:$0xff] }
 0x148   : > { %v3006_v57 = vpop.f32.mrf.mxu0  ;;  %1145 = vmatpush.bf16.msrb.mxu1 %v2312_v44  ;;  %v2620_v44 = vld [vmem:[%s3414_s6 + $0x14] sm:$0xf] }
 0x149   : > { %v935_v60 = vmax.f32 %v933_v51, %v934_v55  ;;  %v778_v8 = vmul.f32 0.01, %v3006_v57  ;;  %vm742_vm13 = vcmp.ge.f32.partialorder %v3006_v57, 0.0  ;;  %v2297_v51 = vld [vmem:[%s3414_s6 + $0x38] sm:$0xf0]  ;;  %v2292_v54 = vor.u32 %v2620_v44, %v2289_v46  ;;  %v2650_v46 = vld [vmem:[%s3415_s7 + $0x80] sm:$0xff] }
 0x14a   : > { %v1037_v55 = vunpack.c.h.b16 %v2966_v25 }
 0x14b   : > { %862 = vmatmul.f32.gmra.mxu1 %v833_v58  ;;  %v936_v63 = vrot.slane %v935_v60, 2  ;;  %1174 = vmatpush.bf16.msrb.mxu3 %v2288_v21  ;;  %v814_v56 = vsel %vm742_vm13, %v3006_v57, %v778_v8  ;;  %v2300_v58 = vor.u32 %v2621_v42, %v2297_v51  ;;  %v2638_v21 = vld [vmem:[%s3415_s7 + $0x20] sm:$0xff]  ;;  %v2664_v8 = vld [vmem:[%s3415_s7 + $0xf0] sm:$0xff] }
 0x14c   : > { %1146 = vmatpush.bf16.msrb.mxu1 %v2280_v59  ;;  %v775_v59 = vmul.f32 0.01, %v2944_v11  ;;  %v1061_v61 = vpack.c.b16 %v1037_v55, %v1037_v55  ;;  %v2661_v55 = vld [vmem:[%s3415_s7 + $0xd8] sm:$0xff] }
 0x14d   : > { %v937_v3 = vmax.f32 %v935_v60, %v936_v63  ;;  %v774_v60 = vmul.f32 0.01, %v2932_v0  ;;  %v1040_v63 = vunpack.c.l.b16 %v3034_v22  ;;  %v2643_v22 = vld [vmem:[%s3415_s7 + $0x48] sm:$0xff] }
 0x14e   : > { %2337 = vmatmul.msk.bf16.vlgmr.msrb.gmra.mxu3 %vm1082_vm1, %v2919_v50  ;;  %v811_v25 = vsel %vm739_vm14, %v2944_v11, %v775_v59  ;;  %v1097_v62 = vsel %vm1086_vm0, %v1061_v61, 0  ;;  %v2313_v11 = vld [vmem:[%s3414_s6 + $0x68] sm:$0xf0] }
 0x14f   : > { %v938_v10 = vrot.slane %v937_v3, 1  ;;  %1214 = vmatpush.bf16.msra.mxu3 %v1109_v33  ;;  %v810_v57 = vsel %vm738_vm15, %v2932_v0, %v774_v60  ;;  %v1064_v9 = vpack.c.b16 %v1040_v63, %v1040_v63  ;;  %v2655_v33 = vld [vmem:[%s3415_s7 + $0xa8] sm:$0xff]  ;;  %v2680_v63 = vld [vmem:[%s3415_s7 + $0x170] sm:$0xff] }
 0x150   : > { %v684_v13 = vpop.f32.mrf.mxu0  ;;  %1186 = vmatpush.bf16.msra.mxu1 %v1103_v30  ;;  %v2653_v30 = vld [vmem:[%s3415_s7 + $0x98] sm:$0xff]  ;;  %v2659_v61 = vld [vmem:[%s3415_s7 + $0xc8] sm:$0xff] }
 0x151   : > { %v939_v4 = vmax.f32 %v937_v3, %v938_v10  ;;  %v779_v34 = vmul.f32 0.01, %v684_v13  ;;  %vm743_vm12 = vcmp.ge.f32.partialorder %v684_v13, 0.0  ;;  %v2619_v3 = vld [vmem:[%s3414_s6 + $0xc] sm:$0xf]  ;;  %v834_v10 = vld [vmem:[%s3413_s5 + $0x20] sm:$0xff] }
 0x152   : > { %v2284_v12 = vor.u32 %v2619_v3, %v2281_v6 }
 0x153   : > { %2335 = vmatmul.msk.bf16.vlgmr.msrb.gmra.mxu1 %vm1082_vm1, %v2919_v50  ;;  %v952_v17 = vsel %vm951_vm8, %v950_v15, %v939_v4  ;;  %v815_v53 = vsel %vm743_vm12, %v684_v13, %v779_v34  ;;  %1215 = vmatpush.bf16.msra.mxu3 %v2332_v49  ;;  %v1106_v13 = vsel %vm1086_vm0, %v1064_v9, 0  ;;  %v2327_v4 = vld [vmem:[%s3414_s6 + $0x58] sm:$0xf]  ;;  %v2654_v34 = vld [vmem:[%s3415_s7 + $0xa0] sm:$0xff] }
 0x154   : > { %v3023_v18 = vsel %vm953_vm9, %v952_v17, %v948_v52  ;;  %1187 = vmatpush.bf16.msra.mxu1 %v2324_v39  ;;  %v2640_v52 = vld [vmem:[%s3415_s7 + $0x30] sm:$0xff]  ;;  %v2328_v15 = vor.u32 %v2633_v14, %v2327_v4  ;;  %v2625_v17 = vld [vmem:[%s3414_s6 + $0x34] sm:$0xf0] }
 0x155   : > { %v2296_v45 = vor.u32 %v2625_v17, %v2295_v47  ;;  %v2673_v9 = vld [vmem:[%s3415_s7 + $0x138] sm:$0xff]  ;;  %v2672_v4 = vld [vmem:[%s3415_s7 + $0x130] sm:$0xff]  ;;  %v2675_v47 = vld [vmem:[%s3415_s7 + $0x148] sm:$0xff] }
 0x156   : > { %v2676_v14 = vld [vmem:[%s3415_s7 + $0x150] sm:$0xff] }
 0x157   : > { %1216 = vmatpush.bf16.msra.mxu3 %v2300_v58  ;;  %v2660_v58 = vld [vmem:[%s3415_s7 + $0xd0] sm:$0xff] }
 0x158   : > { %v687_v20 = vpop.f32.mrf.mxu0  ;;  %1188 = vmatpush.bf16.msra.mxu1 %v2292_v54 }
 0x159   : > { %v780_v27 = vmul.f32 0.01, %v687_v20  ;;  %vm744_vm11 = vcmp.ge.f32.partialorder %v687_v20, 0.0 }
 0x15b   : > { %v816_v43 = vsel %vm744_vm11, %v687_v20, %v780_v27  ;;  %1779 = vmatpush.bf16.msrb.mxu3 %v2649_v1  ;;  %v2644_v20 = vld [vmem:[%s3415_s7 + $0x50] sm:$0xff]  ;;  %v2679_v1 = vld [vmem:[%s3415_s7 + $0x168] sm:$0xff]  ;;  %vm1761_vm11 = vcmask 523264  }
 0x15c   : > { %1765 = vmatpush.bf16.msrb.mxu1 %v2641_v2  ;;  %v2636_v27 = vld [vmem:[%s3415_s7 + $0x10] sm:$0xff]  ;;  %v2678_v2 = vld [vmem:[%s3415_s7 + $0x160] sm:$0xff] }
 0x15e   : > { %2340 = vmatmul.msk.bf16.vlgmr.msra.gmra.mxu3 %vm1082_vm1, %v2919_v50 }
 0x15f   : > { %1780 = vmatpush.bf16.msrb.mxu3 %v2648_v7  ;;  %v2658_v7 = vld [vmem:[%s3415_s7 + $0xc0] sm:$0xff] }
 0x160   : > { %v689_v29 = vpop.f32.mrf.mxu0  ;;  %1766 = vmatpush.bf16.msrb.mxu1 %v2640_v52 }
 0x161   : > { %vm745_vm10 = vcmp.ge.f32.partialorder %v689_v29, 0.0  ;;  %v781_v31 = vmul.f32 0.01, %v689_v29 }
 0x163   : > { %v817_v35 = vsel %vm745_vm10, %v689_v29, %v781_v31  ;;  %2338 = vmatmul.msk.bf16.vlgmr.msra.gmra.mxu1 %vm1082_vm1, %v2919_v50  ;;  %1781 = vmatpush.bf16.msrb.mxu3 %v2647_v5  ;;  %v2656_v29 = vld [vmem:[%s3415_s7 + $0xb0] sm:$0xff]  ;;  %v2635_v31 = vld [vmem:[%s3415_s7 + $0x8] sm:$0xff] }
 0x164   : > { %874 = vmatpush.msrb.mxu2 %v817_v35  ;;  %1767 = vmatpush.bf16.msrb.mxu1 %v2639_v23  ;;  %v2670_v23 = vld [vmem:[%s3415_s7 + $0x120] sm:$0xff] }
 0x166   : > { %875 = vmatpush.msrb.mxu2 %v816_v43  ;;  %v2663_v43 = vld [vmem:[%s3415_s7 + $0xe8] sm:$0xff] }
 0x167   : > { %1782 = vmatpush.bf16.msrb.mxu3 %v2646_v16  ;;  %v2671_v16 = vld [vmem:[%s3415_s7 + $0x128] sm:$0xff] }
 0x168   : > { %876 = vmatpush.msrb.mxu2 %v815_v53  ;;  %1768 = vmatpush.bf16.msrb.mxu1 %v2638_v21 }
 0x16a   : > { %877 = vmatpush.msrb.mxu2 %v814_v56 }
 0x16b   : > { %1783 = vmatpush.bf16.msrb.mxu3 %v2645_v19  ;;  %v2669_v19 = vld [vmem:[%s3415_s7 + $0x118] sm:$0xff] }
 0x16c   : > { %878 = vmatpush.msrb.mxu2 %v2994_v41  ;;  %v831_v41 = vld [vmem:[%s3413_s5 + $0x8] sm:$0xff]  ;;  %1769 = vmatpush.bf16.msrb.mxu1 %v2637_v37  ;;  %v2693_v37 = vld [vmem:[%s3415_s7 + $0x1d8] sm:$0xff] }
 0x16e   : > { %879 = vmatpush.msrb.mxu2 %v2991_v38  ;;  %v2627_v38 = vld [vmem:[%s3414_s6 + $0x4c] sm:$0xf] }
 0x16f   : > { %v2316_v0 = vor.u32 %v2627_v38, %v2313_v11  ;;  %1784 = vmatpush.bf16.msrb.mxu3 %v2644_v20  ;;  %v2668_v20 = vld [vmem:[%s3415_s7 + $0x110] sm:$0xff] }
 0x170   : > { %880 = vmatpush.msrb.mxu2 %v811_v25  ;;  %1770 = vmatpush.bf16.msrb.mxu1 %v2636_v27 }
 0x172   : > { %881 = vmatpush.msrb.mxu2 %v810_v57 }
 0x173   : > { %882 = vmatmul.f32.vlgmr.msrb.gmra.mxu2 %v831_v41  ;;  %1785 = vmatpush.bf16.msrb.mxu3 %v2643_v22 }
 0x174   : > { %1158 = vmatpush.bf16.msra.mxu2 %v1097_v62  ;;  %1771 = vmatpush.bf16.msrb.mxu1 %v2635_v31  ;;  %v2681_v62 = vld [vmem:[%s3415_s7 + $0x178] sm:$0xff] }
 0x177   : > { %1786 = vmatpush.bf16.msrb.mxu3 %v2642_v24  ;;  %v2667_v24 = vld [vmem:[%s3415_s7 + $0x108] sm:$0xff] }
 0x178   : > { %1159 = vmatpush.bf16.msra.mxu2 %v2316_v0 }
 0x17b   : > { %885 = vmatmul.f32.gmra.mxu2 %v834_v10  ;;  %1793 = vmatpush.bf16.msra.mxu3 %v2657_v26  ;;  %v2677_v10 = vld [vmem:[%s3415_s7 + $0x158] sm:$0xff]  ;;  %v2692_v26 = vld [vmem:[%s3415_s7 + $0x1d0] sm:$0xff] }
 0x17c   : > { %1160 = vmatpush.bf16.msra.mxu2 %v2284_v12 }
 0x17f   : > { %1794 = vmatpush.bf16.msra.mxu3 %v2656_v29  ;;  %v2666_v29 = vld [vmem:[%s3415_s7 + $0x100] sm:$0xff] }
 0x180   : > { %1200 = vmatpush.bf16.msrb.mxu2 %v1106_v13 }
 0x183   : > { %2336 = vmatmul.msk.bf16.vlgmr.msra.gmra.mxu2 %vm1082_vm1, %v2919_v50  ;;  %1795 = vmatpush.bf16.msra.mxu3 %v2655_v33 }
 0x184   : > { %1201 = vmatpush.bf16.msrb.mxu2 %v2328_v15 }
 0x187   : > { %1796 = vmatpush.bf16.msra.mxu3 %v2654_v34 }
 0x188   : > { %1202 = vmatpush.bf16.msrb.mxu2 %v2296_v45  ;;  %v2674_v45 = vld [vmem:[%s3415_s7 + $0x140] sm:$0xff] }
 0x18b   : > { %1797 = vmatpush.bf16.msra.mxu3 %v2653_v30  ;;  %v2691_v30 = vld [vmem:[%s3415_s7 + $0x1c8] sm:$0xff] }
 0x18c   : > { %1867 = vmatpush.bf16.msra.mxu2 %v2693_v37 }
 0x18f   : > { %1798 = vmatpush.bf16.msra.mxu3 %v2652_v28 }
 0x190   : > { %1868 = vmatpush.bf16.msra.mxu2 %v2692_v26  ;;  %v1883_v26 = vld [vmem:[%s405_s15] sm:$0xf] }
 0x193   : > { %2339 = vmatmul.msk.bf16.vlgmr.msrb.gmra.mxu2 %vm1082_vm1, %v2919_v50  ;;  %v2634_v50 = vld [vmem:[%s3415_s7] sm:$0xff]  ;;  %1799 = vmatpush.bf16.msra.mxu3 %v2651_v40 }
 0x194   : > { %v3169_v32 = vpop.f32.mrf.mxu3  ;;  %1772 = vmatpush.bf16.msrb.mxu1 %v2634_v50  ;;  %1869 = vmatpush.bf16.msra.mxu2 %v2691_v30  ;;  %v2690_v40 = vld [vmem:[%s3415_s7 + $0x1c0] sm:$0xff] }
 0x197   : > { %1800 = vmatpush.bf16.msra.mxu3 %v2650_v46 }
 0x198   : > { %1807 = vmatpush.bf16.msra.mxu1 %v2665_v36  ;;  %1870 = vmatpush.bf16.msra.mxu2 %v2690_v40 }
 0x19c   : > { %v3177_v35 = vpop.f32.mrf.mxu3  ;;  %1808 = vmatpush.bf16.msra.mxu1 %v2664_v8 }
 0x1a0   : > { %1809 = vmatpush.bf16.msra.mxu1 %v2663_v43 }
 0x1a4   : > { %v1120_v39 = vpop.f32.mrf.mxu3  ;;  %1810 = vmatpush.bf16.msra.mxu1 %v2662_v48 }
 0x1a5   : > { %v1239_v44 = vmul.f32 0.01, %v1120_v39  ;;  %vm1223_vm0 = vcmp.ge.f32.partialorder %v1120_v39, 0.0 }
 0x1a7   : > { %v1255_v42 = vsel %vm1223_vm0, %v1120_v39, %v1239_v44 }
 0x1a8   : > { %1811 = vmatpush.bf16.msra.mxu1 %v2661_v55 }
 0x1ac   : > { %v1122_v49 = vpop.f32.mrf.mxu3  ;;  %1812 = vmatpush.bf16.msra.mxu1 %v2660_v58 }
 0x1ad   : > { %vm1231_vm1 = vcmp.ge.f32.partialorder %v1122_v49, 0.0  ;;  %v1247_v51 = vmul.f32 0.01, %v1122_v49 }
 0x1af   : > { %v1263_v53 = vsel %vm1231_vm1, %v1122_v49, %v1247_v51 }
 0x1b0   : > { %v1271_v54 = vpack.c.bf16 %v1263_v53, %v1255_v42  ;;  %1813 = vmatpush.bf16.msra.mxu1 %v2659_v61 }
 0x1b2   : > { %1773 = vmatmul.bf16.vlgmr.msrb.gmra.mxu1 %v1271_v54 }
 0x1b4   : > { %v1134_v56 = vpop.f32.mrf.mxu3  ;;  %1814 = vmatpush.bf16.msra.mxu1 %v2658_v7 }
 0x1b5   : > { %v1240_v59 = vmul.f32 0.01, %v1134_v56  ;;  %vm1224_vm4 = vcmp.ge.f32.partialorder %v1134_v56, 0.0 }
 0x1b7   : > { %v1256_v25 = vsel %vm1224_vm4, %v1134_v56, %v1240_v59  ;;  %vm1886_vm4 = vcmask 130048  }
 0x1b8   : > { %1821 = vmatpush.bf16.msrb.mxu1 %v2673_v9  ;;  %v2684_v9 = vld [vmem:[%s3415_s7 + $0x190] sm:$0xff] }
 0x1bc   : > { %v1136_v60 = vpop.f32.mrf.mxu3  ;;  %1822 = vmatpush.bf16.msrb.mxu1 %v2672_v4  ;;  %v2682_v4 = vld [vmem:[%s3415_s7 + $0x180] sm:$0xff] }
 0x1bd   : > { %vm1232_vm5 = vcmp.ge.f32.partialorder %v1136_v60, 0.0  ;;  %v1248_v41 = vmul.f32 0.01, %v1136_v60 }
 0x1bf   : > { %v1264_v57 = vsel %vm1232_vm5, %v1136_v60, %v1248_v41 }
 0x1c0   : > { %v3218_v38 = vpop.f32.mrf.mxu1  ;;  %v1272_v11 = vpack.c.bf16 %v1264_v57, %v1256_v25  ;;  %1823 = vmatpush.bf16.msrb.mxu1 %v2671_v16 }
 0x1c2   : > { %1787 = vmatmul.bf16.vlgmr.msrb.gmra.mxu3 %v1272_v11 }
 0x1c3   : > { %1835 = vmatpush.bf16.msrb.mxu3 %v2681_v62 }
 0x1c4   : > { %1824 = vmatpush.bf16.msrb.mxu1 %v2670_v23 }
 0x1c7   : > { %1836 = vmatpush.bf16.msrb.mxu3 %v2680_v63 }
 0x1c8   : > { %v3226_v0 = vpop.f32.mrf.mxu1  ;;  %1825 = vmatpush.bf16.msrb.mxu1 %v2669_v19 }
 0x1cb   : > { %1837 = vmatpush.bf16.msrb.mxu3 %v2679_v1  ;;  %v2686_v1 = vld [vmem:[%s3415_s7 + $0x1a0] sm:$0xff] }
 0x1cc   : > { %1826 = vmatpush.bf16.msrb.mxu1 %v2668_v20 }
 0x1cf   : > { %1838 = vmatpush.bf16.msrb.mxu3 %v2678_v2 }
 0x1d0   : > { %v1148_v3 = vpop.f32.mrf.mxu1  ;;  %1827 = vmatpush.bf16.msrb.mxu1 %v2667_v24 }
 0x1d1   : > { %v1241_v6 = vmul.f32 0.01, %v1148_v3  ;;  %vm1225_vm6 = vcmp.ge.f32.partialorder %v1148_v3, 0.0  ;;  %v3252_v17 = vpop.f32.mrf.mxu3 }
 0x1d2   : > { %v1243_v11 = vmul.f32 0.01, %v3252_v17  ;;  %vm1227_vm14 = vcmp.ge.f32.partialorder %v3252_v17, 0.0 }
 0x1d3   : > { %1839 = vmatpush.bf16.msrb.mxu3 %v2677_v10  ;;  %v1257_v5 = vsel %vm1225_vm6, %v1148_v3, %v1241_v6  ;;  %v2685_v6 = vld [vmem:[%s3415_s7 + $0x198] sm:$0xff] }
 0x1d4   : > { %1828 = vmatpush.bf16.msrb.mxu1 %v2666_v29  ;;  %v1259_v2 = vsel %vm1227_vm14, %v3252_v17, %v1243_v11  ;;  %v1939_v29 = vld [vmem:[%s3416_s8 + $0x38] sm:$0xff]  ;;  %v1936_v11 = vld [vmem:[%s3416_s8 + $0x20] sm:$0xff] }
 0x1d7   : > { %1840 = vmatpush.bf16.msrb.mxu3 %v2676_v14 }
 0x1d8   : > { %v1150_v12 = vpop.f32.mrf.mxu1 }
 0x1d9   : > { %vm1233_vm7 = vcmp.ge.f32.partialorder %v1150_v12, 0.0  ;;  %v1249_v13 = vmul.f32 0.01, %v1150_v12  ;;  %v3266_v21 = vpop.f32.mrf.mxu3 }
 0x1da   : > { %v1251_v63 = vmul.f32 0.01, %v3266_v21  ;;  %vm1235_vm15 = vcmp.ge.f32.partialorder %v3266_v21, 0.0 }
 0x1db   : > { %v1265_v52 = vsel %vm1233_vm7, %v1150_v12, %v1249_v13  ;;  %1841 = vmatpush.bf16.msrb.mxu3 %v2675_v47  ;;  %v2683_v12 = vld [vmem:[%s3415_s7 + $0x188] sm:$0xff] }
 0x1dc   : > { %v1273_v15 = vpack.c.bf16 %v1265_v52, %v1257_v5  ;;  %v1267_v3 = vsel %vm1235_vm15, %v3266_v21, %v1251_v63  ;;  %v2712_v21 = vld [vmem:[%s3417_s9] ss:$0 sm:$0xff] }
 0x1dd   : > { %v1275_v7 = vpack.c.bf16 %v1267_v3, %v1259_v2  ;;  %v1932_v63 = vld [vmem:[%s3416_s8] sm:$0xff]  ;;  %v1991_v2 = vld [vmem:[%s3416_s8 + $0x50] sm:$0xff]  ;;  %v1990_v3 = vld [vmem:[%s3416_s8 + $0x48] sm:$0xff] }
 0x1de   : > { %1801 = vmatmul.bf16.vlgmr.msra.gmra.mxu3 %v1273_v15 }
 0x1df   : > { %1842 = vmatpush.bf16.msrb.mxu3 %v2674_v45 }
 0x1e0   : > { %v1190_v22 = vpop.f32.mrf.mxu1 }
 0x1e1   : > { %vm1228_vm2 = vcmp.ge.f32.partialorder %v1190_v22, 0.0  ;;  %v1244_v27 = vmul.f32 0.01, %v1190_v22  ;;  %v1218_v31 = vpop.f32.mrf.mxu3 }
 0x1e2   : > { %v1246_v39 = vmul.f32 0.01, %v1218_v31  ;;  %vm1230_vm9 = vcmp.ge.f32.partialorder %v1218_v31, 0.0 }
 0x1e3   : > { %v1260_v34 = vsel %vm1228_vm2, %v1190_v22, %v1244_v27 }
 0x1e4   : > { %v1262_v44 = vsel %vm1230_vm9, %v1218_v31, %v1246_v39  ;;  %v1938_v31 = vld [vmem:[%s3416_s8 + $0x30] sm:$0xff] }
 0x1e8   : > { %v1192_v33 = vpop.f32.mrf.mxu1 }
 0x1e9   : > { %v1252_v50 = vmul.f32 0.01, %v1192_v33  ;;  %vm1236_vm8 = vcmp.ge.f32.partialorder %v1192_v33, 0.0  ;;  %v1220_v43 = vpop.f32.mrf.mxu3 }
 0x1ea   : > { %vm1238_vm10 = vcmp.ge.f32.partialorder %v1220_v43, 0.0  ;;  %v1254_v46 = vmul.f32 0.01, %v1220_v43 }
 0x1eb   : > { %v1268_v28 = vsel %vm1236_vm8, %v1192_v33, %v1252_v50  ;;  %v1937_v50 = vld [vmem:[%s3416_s8 + $0x28] sm:$0xff] }
 0x1ec   : > { %v1276_v8 = vpack.c.bf16 %v1268_v28, %v1260_v34  ;;  %v1270_v42 = vsel %vm1238_vm10, %v1220_v43, %v1254_v46 }
 0x1ed   : > { %v1278_v53 = vpack.c.bf16 %v1270_v42, %v1262_v44 }
 0x1ee   : > { %1843 = vmatmul.bf16.vlgmr.msrb.gmra.mxu3 %v1276_v8 }
 0x1ef   : > { %2581 = vmatmul.msk.bf16.vlgmr.msra.gmra.mxu2 %vm1761_vm11, %v1278_v53 }
 0x1f6   : > { %v883_v36 = vpop.f32.mrf.mxu2 }
 0x1f7   : > { %v884_v48 = vadd.f32 %v883_v36, %v3218_v38  ;;  %v2687_v38 = vld [vmem:[%s3415_s7 + $0x1a8] sm:$0xff] }
 0x1f9   : > { %v907_v54 = vadd.f32 %v3169_v32, %v884_v48  ;;  %v2689_v32 = vld [vmem:[%s3415_s7 + $0x1b8] sm:$0xff] }
 0x1fb   : > { %v1884_v58 = vmax.f32 %v907_v54, 0.0 }
 0x1fe   : > { %v886_v49 = vpop.f32.mrf.mxu2 }
 0x1ff   : > { %v887_v51 = vadd.f32 %v886_v49, %v3226_v0 }
 0x201   : > { %v910_v55 = vadd.f32 %v3177_v35, %v887_v51  ;;  %v2688_v35 = vld [vmem:[%s3415_s7 + $0x1b0] sm:$0xff] }
 0x203   : > { %v1885_v56 = vmax.f32 %v910_v55, 0.0 }
 0x205   : > { %1904 = vmatpush.msra.mxu3 %v1885_v56 }
 0x206   : > { %v1162_v59 = vpop.f32.mrf.mxu2 }
 0x207   : > { %1905 = vmatpush.msra.mxu3 %v1884_v58  ;;  %v1242_v60 = vmul.f32 0.01, %v1162_v59  ;;  %vm1226_vm12 = vcmp.ge.f32.partialorder %v1162_v59, 0.0 }
 0x208   : > { %2582 = vmatmul.msk.f32.vlgmr.msra.gmra.mxu3 %vm1886_vm4, %v1883_v26 }
 0x209   : > { %v1258_v41 = vsel %vm1226_vm12, %v1162_v59, %v1242_v60  ;;  %1955 = vmatpush.msrb.mxu3 %v1939_v29 }
 0x20b   : > { %1956 = vmatpush.msrb.mxu3 %v1938_v31 }
 0x20d   : > { %1957 = vmatpush.msrb.mxu3 %v1937_v50 }
 0x20e   : > { %v1164_v61 = vpop.f32.mrf.mxu2 }
 0x20f   : > { %vm1234_vm13 = vcmp.ge.f32.partialorder %v1164_v61, 0.0  ;;  %v1250_v25 = vmul.f32 0.01, %v1164_v61  ;;  %1958 = vmatpush.msrb.mxu3 %v1936_v11 }
 0x211   : > { %v1266_v57 = vsel %vm1234_vm13, %v1164_v61, %v1250_v25 }
 0x212   : > { %v1274_v62 = vpack.c.bf16 %v1266_v57, %v1258_v41 }
 0x214   : > { %1815 = vmatmul.bf16.vlgmr.msra.gmra.mxu1 %v1274_v62  ;;  %v1935_v62 = vld [vmem:[%s3416_s8 + $0x18] sm:$0xff] }
 0x215   : > { %1849 = vmatpush.bf16.msra.mxu1 %v2689_v32 }
 0x216   : > { %v1204_v0 = vpop.f32.mrf.mxu2 }
 0x217   : > { %v1245_v5 = vmul.f32 0.01, %v1204_v0  ;;  %vm1229_vm0 = vcmp.ge.f32.partialorder %v1204_v0, 0.0 }
 0x219   : > { %1850 = vmatpush.bf16.msra.mxu1 %v2688_v35  ;;  %v1261_v14 = vsel %vm1229_vm0, %v1204_v0, %v1245_v5  ;;  %v1934_v35 = vld [vmem:[%s3416_s8 + $0x10] sm:$0xff]  ;;  %v1992_v0 = vld [vmem:[%s3416_s8 + $0x58] sm:$0xff]  ;;  %v2018_v5 = vld [vmem:[%s3416_s8 + $0x60] sm:$0xff] }
 0x21a   : > { %2010 = vmatpush.msra.mxu3 %v1992_v0 }
 0x21c   : > { %2011 = vmatpush.msra.mxu3 %v1991_v2 }
 0x21d   : > { %1851 = vmatpush.bf16.msra.mxu1 %v2687_v38  ;;  %v1933_v38 = vld [vmem:[%s3416_s8 + $0x8] sm:$0xff] }
 0x21e   : > { %v1206_v10 = vpop.f32.mrf.mxu2  ;;  %2012 = vmatpush.msra.mxu3 %v1990_v3 }
 0x21f   : > { %v1253_v13 = vmul.f32 0.01, %v1206_v10  ;;  %vm1237_vm1 = vcmp.ge.f32.partialorder %v1206_v10, 0.0 }
 0x221   : > { %1852 = vmatpush.bf16.msra.mxu1 %v2686_v1  ;;  %v1269_v52 = vsel %vm1237_vm1, %v1206_v10, %v1253_v13  ;;  %v2020_v10 = vld [vmem:[%s3416_s8 + $0x70] sm:$0xff] }
 0x222   : > { %v1277_v15 = vpack.c.bf16 %v1269_v52, %v1261_v14 }
 0x224   : > { %1829 = vmatmul.bf16.vlgmr.msrb.gmra.mxu1 %v1275_v7  ;;  %v2021_v7 = vld [vmem:[%s3416_s8 + $0x78] sm:$0xff] }
 0x225   : > { %1853 = vmatpush.bf16.msra.mxu1 %v2685_v6  ;;  %v1989_v6 = vld [vmem:[%s3416_s8 + $0x40] sm:$0xff] }
 0x226   : > { %2013 = vmatpush.msra.mxu3 %v1989_v6 }
 0x229   : > { %1854 = vmatpush.bf16.msra.mxu1 %v2684_v9 }
 0x22d   : > { %1855 = vmatpush.bf16.msra.mxu1 %v2683_v12  ;;  %v2019_v12 = vld [vmem:[%s3416_s8 + $0x68] sm:$0xff] }
 0x22f   : > { %v1774_v16 = vpop.f32.mrf.mxu1 }
 0x230   : > { %v1775_v37 = vadd.f32 %v2712_v21, %v1774_v16 }
 0x231   : > { %1856 = vmatpush.bf16.msra.mxu1 %v2682_v4 }
 0x234   : > { %1857 = vmatmul.bf16.vlgmr.msra.gmra.mxu1 %v1277_v15  ;;  %v2714_v15 = vld [vmem:[%s3417_s9 + $0x2] ss:$0 sm:$0xff] }
 0x235   : > { %2039 = vmatpush.msrb.mxu1 %v2021_v7 }
 0x237   : > { %v1776_v17 = vpop.f32.mrf.mxu1  ;;  %2040 = vmatpush.msrb.mxu1 %v2020_v10 }
 0x238   : > { %v1777_v33 = vadd.f32 %v2712_v21, %v1776_v17  ;;  %v2715_v17 = vld [vmem:[%s3417_s9 + $0x3] ss:$0 sm:$0xff] }
 0x239   : > { %2041 = vmatpush.msrb.mxu1 %v2019_v12 }
 0x23b   : > { %2042 = vmatpush.msrb.mxu1 %v2018_v5 }
 0x245   : > { %v1788_v47 = vpop.f32.mrf.mxu3 }
 0x246   : > { %v1789_v27 = vadd.f32 %v1788_v47, %v1775_v37 }
 0x24d   : > { %v1790_v23 = vpop.f32.mrf.mxu3 }
 0x24e   : > { %v1791_v36 = vadd.f32 %v1790_v23, %v1777_v33 }
 0x261   : > { %v1802_v20 = vpop.f32.mrf.mxu3 }
 0x262   : > { %v1803_v30 = vadd.f32 %v1802_v20, %v1789_v27  ;;  %v2047_v20 = vld [vmem:[%s409_s21] sm:$0xf] }
 0x269   : > { %v1804_v24 = vpop.f32.mrf.mxu3 }
 0x26a   : > { %v1805_v40 = vadd.f32 %v1804_v24, %v1791_v36 }
 0x271   : > { %v1844_v8 = vpop.f32.mrf.mxu3 }
 0x272   : > { %v1872_v44 = vpop.f32.mrf.mxu2 }
 0x279   : > { %v1846_v51 = vpop.f32.mrf.mxu3 }
 0x27a   : > { %v1874_v58 = vpop.f32.mrf.mxu2 }
 0x28b   : > { %v1907_v1 = vpop.f32.mrf.mxu3 }
 0x291   : > { %v1816_v45 = vpop.f32.mrf.mxu1 }
 0x292   : > { %v1817_v28 = vadd.f32 %v1816_v45, %v1803_v30 }
 0x299   : > { %v1818_v19 = vpop.f32.mrf.mxu1 }
 0x29a   : > { %v1819_v46 = vadd.f32 %v1818_v19, %v1805_v40 }
 0x2a1   : > { %v1830_v22 = vpop.f32.mrf.mxu1 }
 0x2a2   : > { %v1831_v39 = vadd.f32 %v1830_v22, %v1817_v28 }
 0x2a4   : > { %v1845_v48 = vadd.f32 %v1844_v8, %v1831_v39 }
 0x2a9   : > { %v1832_v34 = vpop.f32.mrf.mxu1 }
 0x2aa   : > { %v1833_v49 = vadd.f32 %v1832_v34, %v1819_v46 }
 0x2ac   : > { %v1847_v53 = vadd.f32 %v1846_v51, %v1833_v49 }
 0x2b1   : > { %v1858_v43 = vpop.f32.mrf.mxu1 }
 0x2b2   : > { %v1859_v42 = vadd.f32 %v1858_v43, %v1845_v48 }
 0x2b4   : > { %v1873_v54 = vadd.f32 %v1872_v44, %v1859_v42 }
 0x2b6   : > { %v1879_v59 = vmul.f32 0.01, %v1873_v54  ;;  %vm1877_vm5 = vcmp.ge.f32.partialorder %v1873_v54, 0.0 }
 0x2b8   : > { %v1881_v41 = vsel %vm1877_vm5, %v1873_v54, %v1879_v59 }
 0x2b9   : > { %v1860_v55 = vpop.f32.mrf.mxu1  ;;  %v1910_v32 = vmax.f32 %v1881_v41, 0.0 }
 0x2ba   : > { %v1861_v56 = vadd.f32 %v1860_v55, %v1847_v53 }
 0x2bc   : > { %v1875_v60 = vadd.f32 %v1874_v58, %v1861_v56 }
 0x2be   : > { %vm1878_vm6 = vcmp.ge.f32.partialorder %v1875_v60, 0.0  ;;  %v1880_v61 = vmul.f32 0.01, %v1875_v60 }
 0x2c0   : > { %v1882_v25 = vsel %vm1878_vm6, %v1875_v60, %v1880_v61 }
 0x2c1   : > { %v1911_v57 = vmax.f32 %v1882_v25, 0.0 }
 0x2c3   : > { %1926 = vmatpush.msrb.mxu2 %v1911_v57 }
 0x2c5   : > { %1927 = vmatpush.msrb.mxu2 %v1910_v32 }
 0x2c6   : > { %2583 = vmatmul.msk.f32.vlgmr.msrb.gmra.mxu2 %vm1886_vm4, %v1883_v26 }
 0x2c7   : > { %1978 = vmatpush.msra.mxu2 %v1935_v62 }
 0x2c9   : > { %1979 = vmatpush.msra.mxu2 %v1934_v35 }
 0x2cb   : > { %1980 = vmatpush.msra.mxu2 %v1933_v38 }
 0x2cd   : > { %1981 = vmatpush.msra.mxu2 %v1932_v63 }
 0x2ce   : > { %2585 = vmatmul.msk.f32.vlgmr.msra.gmra.mxu2 %vm836_vm3, %v1907_v1 }
 0x349   : > { %v1929_v9 = vpop.f32.mrf.mxu2 }
 0x34a   : > { %2584 = vmatmul.msk.f32.vlgmr.msrb.gmra.mxu3 %vm836_vm3, %v1929_v9 }
 0x351   : > { %v1983_v13 = vpop.f32.mrf.mxu2 }
 0x352   : > { %2586 = vmatmul.msk.f32.vlgmr.msra.gmra.mxu3 %vm836_vm3, %v3023_v18  ;;  %v2713_v18 = vld [vmem:[%s3417_s9 + $0x1] ss:$0 sm:$0xff] }
 0x3cd   : > { %v1960_v4 = vpop.f32.mrf.mxu3 }
 0x3ce   : > { %v1984_v14 = vadd.f32 %v1983_v13, %v1960_v4 }
 0x3d0   : > { %v1988_v52 = vadd.f32 %v2713_v18, %v1984_v14 }
 0x3d2   : > { %2587 = vmatmul.msk.f32.vlgmr.msrb.gmra.mxu1 %vm836_vm3, %v1988_v52 }
 0x3d5   : > { %v2015_v16 = vpop.f32.mrf.mxu3 }
 0x3d6   : > { %v2016_v47 = vadd.f32 %v2714_v15, %v2015_v16 }
 0x3d8   : > { %2049 = vrot.lane.b32.xlu0 %v2016_v47, %s2724_s16 }
 0x44a   : > { %v2050_v19 = vpop.permute.xlu0 %2049 }
 0x44b   : > { %v2056_v21 = vsel %vm836_vm3, %v2047_v20, %v2050_v19 }
 0x44f   : > { %v2044_v23 = vpop.f32.mrf.mxu1 }
 0x450   : > { %v2045_v45 = vadd.f32 %v2715_v17, %v2044_v23 }
 0x452   : > { %2053 = vrot.lane.b32.xlu0 %v2045_v45, %s2725_s18 }
 0x4c4   : > { %v2054_v22 = vpop.permute.xlu0 %2053 }
 0x4c5   : > { %v2057_v37 = vsel %vm1761_vm11, %v2056_v21, %v2054_v22 }
 0x4c6   : > { %2058 = vst [vmem:[%s413_s24] sm:$0xf] %v2057_v37 }
 0x4c7 PF: > { %s20_s13 = sadd.s32 1, %s2722_s13  }
 0x4c8   : > { %p17_p5 = scmp.ge.s32.totalorder %s20_s13, 4  }
 0x4ca   :  { %19 = sbr.rel (!%p17_p5) target bundleno = 1 (0x1), region = 99 }

</bundles_post_ra>
